<compile_context>
chip_gen: v7x
topology: tpu7x:2x2x1
jax: 0.10.0
libtpu: 0.0.40
codegen_flags: <defaults>
</compile_context>

<pallas_src>
import jax
import jax.numpy as jnp
import numpy as np
from jax.experimental import pallas as pl
from jax.experimental.pallas import tpu as pltpu

BN_EPS = 1e-5
LANE = 128


def _conv_stats_kernel(xpad_ref, w_ref, conv_ref, stats_ref):
    # xpad_ref: (1, H+2, W+2, C)  zero-padded input image
    # w_ref:    (9*C, Cp)         fused-tap conv weight, Cout zero-padded to Cp
    # conv_ref: (1, H*W, Cp)      conv output (lane-dense)
    # stats_ref:(1, 8, Cp)        row 0 = per-channel sum, row 1 = sum of squares
    _, Hp, Wp, C = xpad_ref.shape
    H, W = Hp - 2, Wp - 2
    M = H * W
    Cp = conv_ref.shape[-1]

    # im2col: 9 shifted windows concatenated on the channel axis -> (M, 9C),
    # then ONE MXU matmul with K = 9C instead of nine K=C matmuls.
    taps = []
    for ky in range(3):
        for kx in range(3):
            taps.append(
                xpad_ref[:, ky:ky + H, kx:kx + W, :]
                .reshape(M, C).astype(jnp.float32))
    patch = jnp.concatenate(taps, axis=-1)                               # (M, 9C)
    acc = jnp.dot(patch, w_ref[...], preferred_element_type=jnp.float32)  # (M, Cp)
    # NOTE: conv bias intentionally omitted -- cancelled exactly by BN mean sub.

    conv_ref[...] = acc.reshape(1, M, Cp)

    # BN statistics fused into the conv pass (per-channel sum / sum-of-squares).
    s = jnp.sum(acc, axis=0, keepdims=True)                              # (1, Cp)
    ss = jnp.sum(acc * acc, axis=0, keepdims=True)                       # (1, Cp)
    stats = jnp.concatenate([s, ss, jnp.zeros((6, Cp), jnp.float32)], axis=0)
    stats_ref[...] = stats.reshape(1, 8, Cp)


def _bn_residual_kernel(conv_ref, xpad_ref, scale_ref, shift_ref, out_ref):
    # conv_ref: (1, H*W, Cp); xpad_ref: (1, H+2, W+2, C)
    # scale_ref / shift_ref: (1, Cp); out_ref: (1, H*W, Cp)
    _, Hp, Wp, C = xpad_ref.shape
    H, W = Hp - 2, Wp - 2
    M = H * W
    Cp = conv_ref.shape[-1]

    # Fused epilogue: normalize+affine collapsed into a single FMA, plus the
    # residual taken from the centre window of the padded input (no second copy
    # of x is passed to the kernel).
    conv = conv_ref[...].reshape(M, Cp)
    y = conv * scale_ref[...] + shift_ref[...]                           # (M, Cp)
    resid = xpad_ref[:, 1:1 + H, 1:1 + W, :].reshape(M, C).astype(jnp.float32)
    if Cp > C:
        resid = jnp.concatenate(
            [resid, jnp.zeros((M, Cp - C), jnp.float32)], axis=-1)
    out_ref[...] = (y + resid).reshape(1, M, Cp).astype(out_ref.dtype)


@jax.jit
def residual_block(x_nchw, w_oihw, bias, gamma, beta):
    """x_nchw: (N,C,H,W) f32; w_oihw: (C,C,3,3); bias/gamma/beta: (C,). -> NCHW."""
    N, C, H, W = x_nchw.shape
    M = H * W
    Cp = ((C + LANE - 1) // LANE) * LANE
    del bias  # per-channel conv bias is exactly cancelled by BN mean subtraction

    # NCHW -> NHWC (+1px zero halo).  The same padded array feeds both passes.
    # TODO(synk): for very large H*W, add a second grid axis over row tiles with
    # halo DMA instead of a whole image per grid step.
    x_nhwc = jnp.transpose(x_nchw, (0, 2, 3, 1))
    xpad = jnp.pad(x_nhwc, ((0, 0), (1, 1), (1, 1), (0, 0)))

    # (Cout, Cin, kh, kw) -> (kh, kw, Cin, Cout) -> (9*Cin, Cout), Cout padded to Cp.
    w2 = jnp.transpose(w_oihw, (2, 3, 1, 0)).reshape(9 * C, C).astype(jnp.float32)
    w2 = jnp.pad(w2, ((0, 0), (0, Cp - C)))

    cparams = pltpu.CompilerParams(
        dimension_semantics=("parallel",),
        vmem_limit_bytes=32 * 1024 * 1024)

    # ---- Pass 1: fused-tap conv (one K=9C matmul) + per-image BN partial stats ----
    conv_out, stats = pl.pallas_call(
        _conv_stats_kernel,
        grid=(N,),
        in_specs=[
            pl.BlockSpec((1, H + 2, W + 2, C), lambda i: (i, 0, 0, 0)),
            pl.BlockSpec((9 * C, Cp), lambda i: (0, 0)),
        ],
        out_specs=(
            pl.BlockSpec((1, M, Cp), lambda i: (i, 0, 0)),
            pl.BlockSpec((1, 8, Cp), lambda i: (i, 0, 0)),
        ),
        out_shape=(
            jax.ShapeDtypeStruct((N, M, Cp), jnp.float32),
            jax.ShapeDtypeStruct((N, 8, Cp), jnp.float32),
        ),
        compiler_params=cparams,
    )(xpad, w2)

    # ---- Tiny glue: fold BN batch statistics into a single scale/shift FMA ----
    Mtot = N * M
    mean = jnp.sum(stats[:, 0, :], axis=0) / Mtot                         # (Cp,)
    var = jnp.maximum(jnp.sum(stats[:, 1, :], axis=0) / Mtot - mean * mean, 0.0)
    gamma_p = jnp.pad(gamma.astype(jnp.float32), (0, Cp - C))
    beta_p = jnp.pad(beta.astype(jnp.float32), (0, Cp - C))
    scale_v = gamma_p * jax.lax.rsqrt(var + BN_EPS)
    shift_v = beta_p - mean * scale_v
    scale = scale_v.reshape(1, Cp)
    shift = shift_v.reshape(1, Cp)

    # ---- Pass 2: normalize + affine + residual add (lane-dense stores) ----
    out_p = pl.pallas_call(
        _bn_residual_kernel,
        grid=(N,),
        in_specs=[
            pl.BlockSpec((1, M, Cp), lambda i: (i, 0, 0)),
            pl.BlockSpec((1, H + 2, W + 2, C), lambda i: (i, 0, 0, 0)),
            pl.BlockSpec((1, Cp), lambda i: (0, 0)),
            pl.BlockSpec((1, Cp), lambda i: (0, 0)),
        ],
        out_specs=pl.BlockSpec((1, M, Cp), lambda i: (i, 0, 0)),
        out_shape=jax.ShapeDtypeStruct((N, M, Cp), x_nchw.dtype),
        compiler_params=cparams,
    )(conv_out, xpad, scale, shift)

    out_nhwc = out_p.reshape(N, H, W, Cp)[..., :C]
    return jnp.transpose(out_nhwc, (0, 3, 1, 2))                          # -> NCHW


def reference(x_nchw, w_oihw, bias, gamma, beta):
    conv = jax.lax.conv_general_dilated(
        x_nchw, w_oihw, window_strides=(1, 1), padding=((1, 1), (1, 1)),
        dimension_numbers=("NCHW", "OIHW", "NCHW"))
    conv = conv + bias[None, :, None, None]          # bias kept here on purpose
    mean = conv.mean(axis=(0, 2, 3), keepdims=True)
    var = ((conv - mean) ** 2).mean(axis=(0, 2, 3), keepdims=True)
    y = (conv - mean) * jax.lax.rsqrt(var + BN_EPS)
    y = y * gamma[None, :, None, None] + beta[None, :, None, None]
    return y + x_nchw


if __name__ == "__main__":
    key = jax.random.PRNGKey(0)
    N, C, H, W = 2, 4, 16, 16
    k_x, k_w, k_b, k_g, k_be = jax.random.split(key, 5)

    x = jax.random.normal(k_x, (N, C, H, W), jnp.float32)
    # module2 conv weight / bias (deterministic synthetic init)
    w_conv2 = jax.random.normal(k_w, (C, C, 3, 3), jnp.float32) * 0.1
    b_conv2 = jax.random.normal(k_b, (C,), jnp.float32) * 0.1
    # module2 BatchNorm affine params
    gamma = 1.0 + 0.1 * jax.random.normal(k_g, (C,), jnp.float32)
    beta = 0.1 * jax.random.normal(k_be, (C,), jnp.float32)

    out = jax.block_until_ready(residual_block(x, w_conv2, b_conv2, gamma, beta))
    ref = jax.block_until_ready(reference(x, w_conv2, b_conv2, gamma, beta))
    np.testing.assert_allclose(np.asarray(out), np.asarray(ref), rtol=1e-3, atol=1e-3)

    print("KERNEL_OK")
</pallas_src>

<mosaic_0001>
module attributes {stable_mosaic.version = 11 : i64} {
  func.func @_conv_stats_kernel(%arg0: i32, %arg1: memref<1x18x18x4xf32, #tpu.memory_space<vmem>>, %arg2: memref<36x128xf32, #tpu.memory_space<vmem>>, %arg3: memref<1x256x128xf32, #tpu.memory_space<vmem>>, %arg4: memref<1x8x128xf32, #tpu.memory_space<vmem>>) attributes {dimension_semantics = [#tpu.dimension_semantics<parallel>], iteration_bounds = array<i64: 2>, scalar_prefetch = 0 : i64, scratch_operands = 0 : i64, tpu.core_type = #tpu.core_type<tc>, window_params = [{transform_indices = @transform_0, window_bounds = array<i64: 1, 18, 18, 4>}, {pipeline_mode = #tpu.pipeline_mode<synchronous>, transform_indices = @transform_1, window_bounds = array<i64: 36, 128>}, {transform_indices = @transform_2, window_bounds = array<i64: 1, 256, 128>}, {transform_indices = @transform_3, window_bounds = array<i64: 1, 8, 128>}]} {
    %c0 = arith.constant 0 : index
    %c0_0 = arith.constant 0 : index
    %c0_1 = arith.constant 0 : index
    %c0_2 = arith.constant 0 : index
    %0 = vector.load %arg1[%c0, %c0_0, %c0_1, %c0_2] : memref<1x18x18x4xf32, #tpu.memory_space<vmem>>, vector<1x16x16x4xf32>
    %1 = vector.shape_cast %0 : vector<1x16x16x4xf32> to vector<256x4xf32>
    %c0_3 = arith.constant 0 : index
    %c0_4 = arith.constant 0 : index
    %c1 = arith.constant 1 : index
    %c0_5 = arith.constant 0 : index
    %2 = vector.load %arg1[%c0_3, %c0_4, %c1, %c0_5] : memref<1x18x18x4xf32, #tpu.memory_space<vmem>>, vector<1x16x16x4xf32>
    %3 = vector.shape_cast %2 : vector<1x16x16x4xf32> to vector<256x4xf32>
    %c0_6 = arith.constant 0 : index
    %c0_7 = arith.constant 0 : index
    %c2 = arith.constant 2 : index
    %c0_8 = arith.constant 0 : index
    %4 = vector.load %arg1[%c0_6, %c0_7, %c2, %c0_8] : memref<1x18x18x4xf32, #tpu.memory_space<vmem>>, vector<1x16x16x4xf32>
    %5 = vector.shape_cast %4 : vector<1x16x16x4xf32> to vector<256x4xf32>
    %c0_9 = arith.constant 0 : index
    %c1_10 = arith.constant 1 : index
    %c0_11 = arith.constant 0 : index
    %c0_12 = arith.constant 0 : index
    %6 = vector.load %arg1[%c0_9, %c1_10, %c0_11, %c0_12] : memref<1x18x18x4xf32, #tpu.memory_space<vmem>>, vector<1x16x16x4xf32>
    %7 = vector.shape_cast %6 : vector<1x16x16x4xf32> to vector<256x4xf32>
    %c0_13 = arith.constant 0 : index
    %c1_14 = arith.constant 1 : index
    %c1_15 = arith.constant 1 : index
    %c0_16 = arith.constant 0 : index
    %8 = vector.load %arg1[%c0_13, %c1_14, %c1_15, %c0_16] : memref<1x18x18x4xf32, #tpu.memory_space<vmem>>, vector<1x16x16x4xf32>
    %9 = vector.shape_cast %8 : vector<1x16x16x4xf32> to vector<256x4xf32>
    %c0_17 = arith.constant 0 : index
    %c1_18 = arith.constant 1 : index
    %c2_19 = arith.constant 2 : index
    %c0_20 = arith.constant 0 : index
    %10 = vector.load %arg1[%c0_17, %c1_18, %c2_19, %c0_20] : memref<1x18x18x4xf32, #tpu.memory_space<vmem>>, vector<1x16x16x4xf32>
    %11 = vector.shape_cast %10 : vector<1x16x16x4xf32> to vector<256x4xf32>
    %c0_21 = arith.constant 0 : index
    %c2_22 = arith.constant 2 : index
    %c0_23 = arith.constant 0 : index
    %c0_24 = arith.constant 0 : index
    %12 = vector.load %arg1[%c0_21, %c2_22, %c0_23, %c0_24] : memref<1x18x18x4xf32, #tpu.memory_space<vmem>>, vector<1x16x16x4xf32>
    %13 = vector.shape_cast %12 : vector<1x16x16x4xf32> to vector<256x4xf32>
    %c0_25 = arith.constant 0 : index
    %c2_26 = arith.constant 2 : index
    %c1_27 = arith.constant 1 : index
    %c0_28 = arith.constant 0 : index
    %14 = vector.load %arg1[%c0_25, %c2_26, %c1_27, %c0_28] : memref<1x18x18x4xf32, #tpu.memory_space<vmem>>, vector<1x16x16x4xf32>
    %15 = vector.shape_cast %14 : vector<1x16x16x4xf32> to vector<256x4xf32>
    %c0_29 = arith.constant 0 : index
    %c2_30 = arith.constant 2 : index
    %c2_31 = arith.constant 2 : index
    %c0_32 = arith.constant 0 : index
    %16 = vector.load %arg1[%c0_29, %c2_30, %c2_31, %c0_32] : memref<1x18x18x4xf32, #tpu.memory_space<vmem>>, vector<1x16x16x4xf32>
    %17 = vector.shape_cast %16 : vector<1x16x16x4xf32> to vector<256x4xf32>
    %18 = tpu.concatenate %1, %3, %5, %7, %9, %11, %13, %15, %17 in 1 : vector<256x4xf32>, vector<256x4xf32>, vector<256x4xf32>, vector<256x4xf32>, vector<256x4xf32>, vector<256x4xf32>, vector<256x4xf32>, vector<256x4xf32>, vector<256x4xf32> -> vector<256x36xf32>
    %c0_33 = arith.constant 0 : index
    %c0_34 = arith.constant 0 : index
    %19 = vector.load %arg2[%c0_33, %c0_34] : memref<36x128xf32, #tpu.memory_space<vmem>>, vector<36x128xf32>
    %cst = arith.constant dense<0.000000e+00> : vector<256x128xf32>
    %20 = tpu.matmul %18, %19, %cst {dimension_numbers = #tpu.dot_dimension_numbers<[1], [0], [0], [1], [0, 0, 1, 1], [], []>} : vector<256x36xf32>, vector<36x128xf32>, vector<256x128xf32> -> vector<256x128xf32>
    %21 = vector.shape_cast %20 : vector<256x128xf32> to vector<1x256x128xf32>
    %c0_35 = arith.constant 0 : index
    %c0_36 = arith.constant 0 : index
    %c0_37 = arith.constant 0 : index
    %22 = vector.load %arg3[%c0_35, %c0_36, %c0_37] : memref<1x256x128xf32, #tpu.memory_space<vmem>>, vector<1x256x128xf32>
    tpu.vector_store %arg3[%c0_35, %c0_36, %c0_37], %21 {strides = array<i32>} : memref<1x256x128xf32, #tpu.memory_space<vmem>>, vector<1x256x128xf32>,
    %cst_38 = arith.constant dense<0.000000e+00> : vector<128xf32>
    %23 = vector.multi_reduction <add>, %20, %cst_38 [0] : vector<256x128xf32> to vector<128xf32>
    %24 = vector.shape_cast %23 : vector<128xf32> to vector<1x128xf32>
    %25 = arith.mulf %20, %20 : vector<256x128xf32>
    %cst_39 = arith.constant dense<0.000000e+00> : vector<128xf32>
    %26 = vector.multi_reduction <add>, %25, %cst_39 [0] : vector<256x128xf32> to vector<128xf32>
    %27 = vector.shape_cast %26 : vector<128xf32> to vector<1x128xf32>
    %cst_40 = arith.constant 0.000000e+00 : f32
    %28 = vector.broadcast %cst_40 : f32 to vector<6x128xf32>
    %29 = tpu.concatenate %24, %27, %28 in 0 : vector<1x128xf32>, vector<1x128xf32>, vector<6x128xf32> -> vector<8x128xf32>
    %30 = vector.shape_cast %29 : vector<8x128xf32> to vector<1x8x128xf32>
    %c0_41 = arith.constant 0 : index
    %c0_42 = arith.constant 0 : index
    %c0_43 = arith.constant 0 : index
    %31 = vector.load %arg4[%c0_41, %c0_42, %c0_43] : memref<1x8x128xf32, #tpu.memory_space<vmem>>, vector<1x8x128xf32>
    tpu.vector_store %arg4[%c0_41, %c0_42, %c0_43], %30 {strides = array<i32>} : memref<1x8x128xf32, #tpu.memory_space<vmem>>, vector<1x8x128xf32>,
    return
  }
  func.func @transform_0(%arg0: i32) -> (i32, i32, i32, i32) {
    %c0_i32 = arith.constant 0 : i32
    %c0_i32_0 = arith.constant 0 : i32
    %c0_i32_1 = arith.constant 0 : i32
    %c0_i32_2 = arith.constant 0 : i32
    return %arg0, %c0_i32, %c0_i32_0, %c0_i32_1 : i32, i32, i32, i32
  }
  func.func @transform_1(%arg0: i32) -> (i32, i32) {
    %c0_i32 = arith.constant 0 : i32
    %c0_i32_0 = arith.constant 0 : i32
    %c0_i32_1 = arith.constant 0 : i32
    return %c0_i32, %c0_i32_0 : i32, i32
  }
  func.func @transform_2(%arg0: i32) -> (i32, i32, i32) {
    %c0_i32 = arith.constant 0 : i32
    %c0_i32_0 = arith.constant 0 : i32
    %c0_i32_1 = arith.constant 0 : i32
    return %arg0, %c0_i32, %c0_i32_0 : i32, i32, i32
  }
  func.func @transform_3(%arg0: i32) -> (i32, i32, i32) {
    %c0_i32 = arith.constant 0 : i32
    %c0_i32_0 = arith.constant 0 : i32
    %c0_i32_1 = arith.constant 0 : i32
    return %arg0, %c0_i32, %c0_i32_0 : i32, i32, i32
  }
}

module attributes {stable_mosaic.version = 11 : i64} {
  func.func @_bn_residual_kernel(%arg0: i32, %arg1: memref<1x256x128xf32, #tpu.memory_space<vmem>>, %arg2: memref<1x18x18x4xf32, #tpu.memory_space<vmem>>, %arg3: memref<1x128xf32, #tpu.memory_space<vmem>>, %arg4: memref<1x128xf32, #tpu.memory_space<vmem>>, %arg5: memref<1x256x128xf32, #tpu.memory_space<vmem>>) attributes {dimension_semantics = [#tpu.dimension_semantics<parallel>], iteration_bounds = array<i64: 2>, scalar_prefetch = 0 : i64, scratch_operands = 0 : i64, tpu.core_type = #tpu.core_type<tc>, window_params = [{transform_indices = @transform_0, window_bounds = array<i64: 1, 256, 128>}, {transform_indices = @transform_1, window_bounds = array<i64: 1, 18, 18, 4>}, {pipeline_mode = #tpu.pipeline_mode<synchronous>, transform_indices = @transform_2, window_bounds = array<i64: 1, 128>}, {pipeline_mode = #tpu.pipeline_mode<synchronous>, transform_indices = @transform_3, window_bounds = array<i64: 1, 128>}, {transform_indices = @transform_4, window_bounds = array<i64: 1, 256, 128>}]} {
    %c0 = arith.constant 0 : index
    %c0_0 = arith.constant 0 : index
    %c0_1 = arith.constant 0 : index
    %0 = vector.load %arg1[%c0, %c0_0, %c0_1] : memref<1x256x128xf32, #tpu.memory_space<vmem>>, vector<1x256x128xf32>
    %1 = vector.shape_cast %0 : vector<1x256x128xf32> to vector<256x128xf32>
    %c0_2 = arith.constant 0 : index
    %c0_3 = arith.constant 0 : index
    %2 = vector.load %arg3[%c0_2, %c0_3] : memref<1x128xf32, #tpu.memory_space<vmem>>, vector<1x128xf32>
    %3 = vector.broadcast %2 : vector<1x128xf32> to vector<256x128xf32>
    %4 = arith.mulf %1, %3 : vector<256x128xf32>
    %c0_4 = arith.constant 0 : index
    %c0_5 = arith.constant 0 : index
    %5 = vector.load %arg4[%c0_4, %c0_5] : memref<1x128xf32, #tpu.memory_space<vmem>>, vector<1x128xf32>
    %6 = vector.broadcast %5 : vector<1x128xf32> to vector<256x128xf32>
    %7 = arith.addf %4, %6 : vector<256x128xf32>
    %c0_6 = arith.constant 0 : index
    %c1 = arith.constant 1 : index
    %c1_7 = arith.constant 1 : index
    %c0_8 = arith.constant 0 : index
    %8 = vector.load %arg2[%c0_6, %c1, %c1_7, %c0_8] : memref<1x18x18x4xf32, #tpu.memory_space<vmem>>, vector<1x16x16x4xf32>
    %9 = vector.shape_cast %8 : vector<1x16x16x4xf32> to vector<256x4xf32>
    %cst = arith.constant 0.000000e+00 : f32
    %10 = vector.broadcast %cst : f32 to vector<256x124xf32>
    %11 = tpu.concatenate %9, %10 in 1 : vector<256x4xf32>, vector<256x124xf32> -> vector<256x128xf32>
    %12 = arith.addf %7, %11 : vector<256x128xf32>
    %13 = vector.shape_cast %12 : vector<256x128xf32> to vector<1x256x128xf32>
    %c0_9 = arith.constant 0 : index
    %c0_10 = arith.constant 0 : index
    %c0_11 = arith.constant 0 : index
    %14 = vector.load %arg5[%c0_9, %c0_10, %c0_11] : memref<1x256x128xf32, #tpu.memory_space<vmem>>, vector<1x256x128xf32>
    tpu.vector_store %arg5[%c0_9, %c0_10, %c0_11], %13 {strides = array<i32>} : memref<1x256x128xf32, #tpu.memory_space<vmem>>, vector<1x256x128xf32>,
    return
  }
  func.func @transform_0(%arg0: i32) -> (i32, i32, i32) {
    %c0_i32 = arith.constant 0 : i32
    %c0_i32_0 = arith.constant 0 : i32
    %c0_i32_1 = arith.constant 0 : i32
    return %arg0, %c0_i32, %c0_i32_0 : i32, i32, i32
  }
  func.func @transform_1(%arg0: i32) -> (i32, i32, i32, i32) {
    %c0_i32 = arith.constant 0 : i32
    %c0_i32_0 = arith.constant 0 : i32
    %c0_i32_1 = arith.constant 0 : i32
    %c0_i32_2 = arith.constant 0 : i32
    return %arg0, %c0_i32, %c0_i32_0, %c0_i32_1 : i32, i32, i32, i32
  }
  func.func @transform_2(%arg0: i32) -> (i32, i32) {
    %c0_i32 = arith.constant 0 : i32
    %c0_i32_0 = arith.constant 0 : i32
    %c0_i32_1 = arith.constant 0 : i32
    return %c0_i32, %c0_i32_0 : i32, i32
  }
  func.func @transform_3(%arg0: i32) -> (i32, i32) {
    %c0_i32 = arith.constant 0 : i32
    %c0_i32_0 = arith.constant 0 : i32
    %c0_i32_1 = arith.constant 0 : i32
    return %c0_i32, %c0_i32_0 : i32, i32
  }
  func.func @transform_4(%arg0: i32) -> (i32, i32, i32) {
    %c0_i32 = arith.constant 0 : i32
    %c0_i32_0 = arith.constant 0 : i32
    %c0_i32_1 = arith.constant 0 : i32
    return %arg0, %c0_i32, %c0_i32_0 : i32, i32, i32
  }
}

</mosaic_0001>

<bundles_post_ra>
// kernel: residual_block.3
= control target key start
LH: loop header
LB: loop body
LE: loop exit
PB: predicated region body
PF: predicated region fallthrough
CT: control target
= control target key end

     0   :  { %s615_s15 = smov 0   ;;  %s851_s0 = inlined_call_operand.vmem [shape: f32[2,256,128], index: 0, kind: input, shape index: {}]   ;;  %s852_s1 = inlined_call_operand.vmem [shape: f32[2,18,18,4], index: 1, kind: input, shape index: {}]   ;;  %s853_s2 = inlined_call_operand.vmem [shape: f32[1,128], index: 2, kind: input, shape index: {}]   ;;  %s854_s3 = inlined_call_operand.vmem [shape: f32[1,128], index: 3, kind: input, shape index: {}]   ;;  %s855_s4 = inlined_call_operand.vmem [shape: f32[2,256,128], index: 4, kind: output, shape index: {}]  }
   0x1 LB: > { %s525_s16 = sadd.s32 4294967295, %s588_s15   ;;  %p529_p0 = scmp.ge.s32.totalorder %s588_s15, 1  ;;  %s588_s15 = sphi %s615_s15, %s14_s15  }
   0x2   : > { %p172_p1 = scmp.lt.s32.totalorder %s588_s15, 3 }
   0x4   : > { %p173_p2 = pnand %p529_p0, %p172_p1 }
   0x5   : > { %p203_p3 = scmp.lt.s32.totalorder (!%p173_p2), %s525_s16, 1  ;;  %v630_v0 = vld [vmem:[%s853_s2] ss:$0 sm:$0xff] (!%p173_p2)  ;;  %vm361_vm0 = vcmask (!%p173_p2), 31744  }
   0x6   : > { %176 = sbr.rel (%p173_p2) target bundleno = 54 (0x36), region = 36  ;;  %v642_v1 = vld [vmem:[%s854_s3] ss:$0 sm:$0xff] (!%p173_p2) }
   0xd   : > { %s857_s16 = smov (!%p203_p3, %s525_s16), 1 }
   0xe   : > { %s571_s17 = sshll.u32 %s857_s16, 8  ;;  %s573_s18 = smul.u32 432, %s857_s16 }
   0xf   : > { %s637_s23 = scalar_lea.vmem %s851_s0, %s571_s17  ;;  %s676_s5 = scalar_lea.vmem %s855_s4, %s571_s17 }
  0x10   : > { %s647_s28 = scalar_lea.vmem %s852_s1, %s573_s18  ;;  %v218_v2 = vld [vmem:[%s637_s23] sm:$0xff]  ;;  %v219_v3 = vld [vmem:[%s637_s23 + $0x8] sm:$0xff]  ;;  %v220_v4 = vld [vmem:[%s637_s23 + $0x10] sm:$0xff] }
  0x11   : > { %v257_v5 = vmul.f32 %v630_v0, %v218_v2  ;;  %v537_v6 = vld [vmem:[%s647_s28 + $0x19] sm:$0xff]  ;;  %v258_v7 = vmul.f32 %v630_v0, %v219_v3  ;;  %v538_v8 = vld [vmem:[%s647_s28 + $0x21] sm:$0xff]  ;;  %v259_v9 = vmul.f32 %v630_v0, %v220_v4  ;;  %v539_v10 = vld [vmem:[%s647_s28 + $0x31] sm:$0xff] }
  0x12   : > { %v362_v11 = vsel %vm361_vm0, %v537_v6, 0.0  ;;  %v363_v12 = vsel %vm361_vm0, %v538_v8, 0.0  ;;  %v364_v13 = vsel %vm361_vm0, %v539_v10, 0.0  ;;  %v221_v14 = vld [vmem:[%s637_s23 + $0x18] sm:$0xff]  ;;  %v222_v16 = vld [vmem:[%s637_s23 + $0x20] sm:$0xff]  ;;  %v541_v21 = vld [vmem:[%s647_s28 + $0x49] sm:$0xff] }
  0x13   : > { %v540_v15 = vld [vmem:[%s647_s28 + $0x39] sm:$0xff]  ;;  %v296_v17 = vadd.f32 %v642_v1, %v257_v5  ;;  %v297_v18 = vadd.f32 %v642_v1, %v258_v7  ;;  %v298_v19 = vadd.f32 %v642_v1, %v259_v9  ;;  %v260_v20 = vmul.f32 %v630_v0, %v221_v14  ;;  %v223_v22 = vld [vmem:[%s637_s23 + $0x28] sm:$0xff]  ;;  %v542_v23 = vld [vmem:[%s647_s28 + $0x51] sm:$0xff] }
  0x14   : > { %v365_v24 = vsel %vm361_vm0, %v540_v15, 0.0  ;;  %v261_v25 = vmul.f32 %v630_v0, %v222_v16  ;;  %v366_v26 = vsel %vm361_vm0, %v541_v21, 0.0  ;;  %v262_v27 = vmul.f32 %v630_v0, %v223_v22  ;;  %v224_v28 = vld [vmem:[%s637_s23 + $0x30] sm:$0xff]  ;;  %v543_v29 = vld [vmem:[%s647_s28 + $0x61] sm:$0xff]  ;;  %v225_v30 = vld [vmem:[%s637_s23 + $0x38] sm:$0xff] }
  0x15   : > { %v394_v31 = vadd.f32 %v362_v11, %v296_v17  ;;  %v395_v32 = vadd.f32 %v363_v12, %v297_v18  ;;  %v396_v33 = vadd.f32 %v364_v13, %v298_v19  ;;  %v299_v34 = vadd.f32 %v642_v1, %v260_v20  ;;  %v544_v35 = vld [vmem:[%s647_s28 + $0x69] sm:$0xff]  ;;  %v226_v36 = vld [vmem:[%s637_s23 + $0x40] sm:$0xff]  ;;  %v547_v53 = vld [vmem:[%s647_s28 + $0x91] sm:$0xff] }
  0x16   : > { %v300_v37 = vadd.f32 %v642_v1, %v261_v25  ;;  %v301_v38 = vadd.f32 %v642_v1, %v262_v27  ;;  %v367_v39 = vsel %vm361_vm0, %v542_v23, 0.0  ;;  %v263_v40 = vmul.f32 %v630_v0, %v224_v28  ;;  %v545_v41 = vld [vmem:[%s647_s28 + $0x79] sm:$0xff]  ;;  %v227_v42 = vld [vmem:[%s637_s23 + $0x48] sm:$0xff]  ;;  %v228_v48 = vld [vmem:[%s637_s23 + $0x50] sm:$0xff] }
  0x17   : > { %426 = vst [vmem:[%s676_s5] sm:$0xff] %v394_v31  ;;  %427 = vst [vmem:[%s676_s5 + $0x8] sm:$0xff] %v395_v32  ;;  %v397_v43 = vadd.f32 %v365_v24, %v299_v34  ;;  %v368_v44 = vsel %vm361_vm0, %v543_v29, 0.0  ;;  %v264_v45 = vmul.f32 %v630_v0, %v225_v30  ;;  %v369_v46 = vsel %vm361_vm0, %v544_v35, 0.0  ;;  %v546_v47 = vld [vmem:[%s647_s28 + $0x81] sm:$0xff]  ;;  %v229_v54 = vld [vmem:[%s637_s23 + $0x58] sm:$0xff] }
  0x18   : > { %428 = vst [vmem:[%s676_s5 + $0x10] sm:$0xff] %v396_v33  ;;  %v398_v49 = vadd.f32 %v366_v26, %v300_v37  ;;  %v399_v50 = vadd.f32 %v367_v39, %v301_v38  ;;  %v302_v51 = vadd.f32 %v642_v1, %v263_v40  ;;  %v265_v52 = vmul.f32 %v630_v0, %v226_v36  ;;  %v548_v58 = vld [vmem:[%s647_s28 + $0x99] sm:$0xff]  ;;  %v549_v2 = vld [vmem:[%s647_s28 + $0xa9] sm:$0xff]  ;;  %v550_v8 = vld [vmem:[%s647_s28 + $0xb1] sm:$0xff] }
  0x19   : > { %429 = vst [vmem:[%s676_s5 + $0x18] sm:$0xff] %v397_v43  ;;  %v303_v55 = vadd.f32 %v642_v1, %v264_v45  ;;  %v370_v56 = vsel %vm361_vm0, %v545_v41, 0.0  ;;  %v266_v57 = vmul.f32 %v630_v0, %v227_v42  ;;  %v230_v59 = vld [vmem:[%s637_s23 + $0x60] sm:$0xff]  ;;  %v371_v62 = vsel %vm361_vm0, %v546_v47, 0.0  ;;  %v231_v3 = vld [vmem:[%s637_s23 + $0x68] sm:$0xff]  ;;  %v232_v9 = vld [vmem:[%s637_s23 + $0x70] sm:$0xff] }
  0x1a   : > { %430 = vst [vmem:[%s676_s5 + $0x20] sm:$0xff] %v398_v49  ;;  %431 = vst [vmem:[%s676_s5 + $0x28] sm:$0xff] %v399_v50  ;;  %v400_v60 = vadd.f32 %v368_v44, %v302_v51  ;;  %v304_v61 = vadd.f32 %v642_v1, %v265_v52  ;;  %v267_v63 = vmul.f32 %v630_v0, %v228_v48  ;;  %v372_v6 = vsel %vm361_vm0, %v547_v53, 0.0  ;;  %v551_v14 = vld [vmem:[%s647_s28 + $0xc1] sm:$0xff]  ;;  %v233_v15 = vld [vmem:[%s637_s23 + $0x78] sm:$0xff] }
  0x1b   : > { %v401_v4 = vadd.f32 %v369_v46, %v303_v55  ;;  %v305_v5 = vadd.f32 %v642_v1, %v266_v57  ;;  %v268_v7 = vmul.f32 %v630_v0, %v229_v54  ;;  %v373_v12 = vsel %vm361_vm0, %v548_v58, 0.0  ;;  %v552_v20 = vld [vmem:[%s647_s28 + $0xc9] sm:$0xff]  ;;  %v234_v21 = vld [vmem:[%s637_s23 + $0x80] sm:$0xff]  ;;  %v555_v38 = vld [vmem:[%s647_s28 + $0xf1] sm:$0xff] }
  0x1c   : > { %432 = vst [vmem:[%s676_s5 + $0x30] sm:$0xff] %v400_v60  ;;  %v402_v10 = vadd.f32 %v370_v56, %v304_v61  ;;  %v306_v11 = vadd.f32 %v642_v1, %v267_v63  ;;  %v269_v13 = vmul.f32 %v630_v0, %v230_v59  ;;  %v374_v18 = vsel %vm361_vm0, %v549_v2, 0.0  ;;  %v553_v26 = vld [vmem:[%s647_s28 + $0xd9] sm:$0xff]  ;;  %v235_v27 = vld [vmem:[%s637_s23 + $0x88] sm:$0xff]  ;;  %v236_v33 = vld [vmem:[%s637_s23 + $0x90] sm:$0xff] }
  0x1d   : > { %433 = vst [vmem:[%s676_s5 + $0x38] sm:$0xff] %v401_v4  ;;  %v403_v16 = vadd.f32 %v371_v62, %v305_v5  ;;  %v307_v17 = vadd.f32 %v642_v1, %v268_v7  ;;  %v270_v19 = vmul.f32 %v630_v0, %v231_v3  ;;  %v375_v24 = vsel %vm361_vm0, %v550_v8, 0.0  ;;  %v554_v32 = vld [vmem:[%s647_s28 + $0xe1] sm:$0xff]  ;;  %v237_v39 = vld [vmem:[%s637_s23 + $0x98] sm:$0xff]  ;;  %v557_v50 = vld [vmem:[%s647_s28 + $0x109] sm:$0xff] }
  0x1e   : > { %434 = vst [vmem:[%s676_s5 + $0x40] sm:$0xff] %v402_v10  ;;  %v404_v22 = vadd.f32 %v372_v6, %v306_v11  ;;  %v308_v23 = vadd.f32 %v642_v1, %v269_v13  ;;  %v271_v25 = vmul.f32 %v630_v0, %v232_v9  ;;  %v376_v30 = vsel %vm361_vm0, %v551_v14, 0.0  ;;  %v556_v44 = vld [vmem:[%s647_s28 + $0xf9] sm:$0xff]  ;;  %v239_v51 = vld [vmem:[%s637_s23 + $0xa8] sm:$0xff]  ;;  %v558_v56 = vld [vmem:[%s647_s28 + $0x111] sm:$0xff] }
  0x1f   : > { %435 = vst [vmem:[%s676_s5 + $0x48] sm:$0xff] %v403_v16  ;;  %v405_v28 = vadd.f32 %v373_v12, %v307_v17  ;;  %v309_v29 = vadd.f32 %v642_v1, %v270_v19  ;;  %v272_v31 = vmul.f32 %v630_v0, %v233_v15  ;;  %v377_v36 = vsel %vm361_vm0, %v552_v20, 0.0  ;;  %v238_v45 = vld [vmem:[%s637_s23 + $0xa0] sm:$0xff]  ;;  %v240_v57 = vld [vmem:[%s637_s23 + $0xb0] sm:$0xff]  ;;  %v241_v63 = vld [vmem:[%s637_s23 + $0xb8] sm:$0xff] }
  0x20   : > { %436 = vst [vmem:[%s676_s5 + $0x50] sm:$0xff] %v404_v22  ;;  %v406_v34 = vadd.f32 %v374_v18, %v308_v23  ;;  %v310_v35 = vadd.f32 %v642_v1, %v271_v25  ;;  %v273_v37 = vmul.f32 %v630_v0, %v234_v21  ;;  %v378_v42 = vsel %vm361_vm0, %v553_v26, 0.0  ;;  %v559_v62 = vld [vmem:[%s647_s28 + $0x121] sm:$0xff]  ;;  %v560_v6 = vld [vmem:[%s647_s28 + $0x129] sm:$0xff]  ;;  %v561_v12 = vld [vmem:[%s647_s28 + $0x139] sm:$0xff] }
  0x21   : > { %437 = vst [vmem:[%s676_s5 + $0x58] sm:$0xff] %v405_v28  ;;  %v407_v40 = vadd.f32 %v375_v24, %v309_v29  ;;  %v311_v41 = vadd.f32 %v642_v1, %v272_v31  ;;  %v274_v43 = vmul.f32 %v630_v0, %v235_v27  ;;  %v379_v48 = vsel %vm361_vm0, %v554_v32, 0.0  ;;  %v242_v7 = vld [vmem:[%s637_s23 + $0xc0] sm:$0xff]  ;;  %v243_v13 = vld [vmem:[%s637_s23 + $0xc8] sm:$0xff]  ;;  %v244_v19 = vld [vmem:[%s637_s23 + $0xd0] sm:$0xff] }
  0x22   : > { %438 = vst [vmem:[%s676_s5 + $0x60] sm:$0xff] %v406_v34  ;;  %v408_v46 = vadd.f32 %v376_v30, %v310_v35  ;;  %v312_v47 = vadd.f32 %v642_v1, %v273_v37  ;;  %v275_v49 = vmul.f32 %v630_v0, %v236_v33  ;;  %v380_v54 = vsel %vm361_vm0, %v555_v38, 0.0  ;;  %v562_v18 = vld [vmem:[%s647_s28 + $0x141] sm:$0xff]  ;;  %v563_v24 = vld [vmem:[%s647_s28 + $0x151] sm:$0xff]  ;;  %v564_v30 = vld [vmem:[%s647_s28 + $0x159] sm:$0xff] }
  0x23   : > { %439 = vst [vmem:[%s676_s5 + $0x68] sm:$0xff] %v407_v40  ;;  %v409_v52 = vadd.f32 %v377_v36, %v311_v41  ;;  %v313_v53 = vadd.f32 %v642_v1, %v274_v43  ;;  %v276_v55 = vmul.f32 %v630_v0, %v237_v39  ;;  %v381_v60 = vsel %vm361_vm0, %v556_v44, 0.0  ;;  %v245_v25 = vld [vmem:[%s637_s23 + $0xd8] sm:$0xff]  ;;  %v246_v31 = vld [vmem:[%s637_s23 + $0xe0] sm:$0xff]  ;;  %v565_v36 = vld [vmem:[%s647_s28 + $0x169] sm:$0xff] }
  0x24   : > { %440 = vst [vmem:[%s676_s5 + $0x70] sm:$0xff] %v408_v46  ;;  %v410_v58 = vadd.f32 %v378_v42, %v312_v47  ;;  %v314_v59 = vadd.f32 %v642_v1, %v275_v49  ;;  %v277_v61 = vmul.f32 %v630_v0, %v238_v45  ;;  %v382_v4 = vsel %vm361_vm0, %v557_v50, 0.0  ;;  %v247_v37 = vld [vmem:[%s637_s23 + $0xe8] sm:$0xff]  ;;  %v566_v42 = vld [vmem:[%s647_s28 + $0x171] sm:$0xff] }
  0x25   : > { %441 = vst [vmem:[%s676_s5 + $0x78] sm:$0xff] %v409_v52  ;;  %v411_v2 = vadd.f32 %v379_v48, %v313_v53  ;;  %v315_v3 = vadd.f32 %v642_v1, %v276_v55  ;;  %v278_v5 = vmul.f32 %v630_v0, %v239_v51  ;;  %v383_v10 = vsel %vm361_vm0, %v558_v56, 0.0  ;;  %v248_v43 = vld [vmem:[%s637_s23 + $0xf0] sm:$0xff]  ;;  %v567_v48 = vld [vmem:[%s647_s28 + $0x181] sm:$0xff]  ;;  %v249_v49 = vld [vmem:[%s637_s23 + $0xf8] sm:$0xff] }
  0x26   : > { %442 = vst [vmem:[%s676_s5 + $0x80] sm:$0xff] %v410_v58  ;;  %v412_v8 = vadd.f32 %v380_v54, %v314_v59  ;;  %v316_v9 = vadd.f32 %v642_v1, %v277_v61  ;;  %v279_v11 = vmul.f32 %v630_v0, %v240_v57  ;;  %v384_v16 = vsel %vm361_vm0, %v559_v62, 0.0  ;;  %v568_v54 = vld [vmem:[%s647_s28 + $0x189] sm:$0xff] }
  0x27   : > { %443 = vst [vmem:[%s676_s5 + $0x88] sm:$0xff] %v411_v2  ;;  %v413_v14 = vadd.f32 %v381_v60, %v315_v3  ;;  %v317_v15 = vadd.f32 %v642_v1, %v278_v5  ;;  %v280_v17 = vmul.f32 %v630_v0, %v241_v63  ;;  %v385_v22 = vsel %vm361_vm0, %v560_v6, 0.0 }
  0x28   : > { %444 = vst [vmem:[%s676_s5 + $0x90] sm:$0xff] %v412_v8  ;;  %v414_v20 = vadd.f32 %v382_v4, %v316_v9  ;;  %v318_v21 = vadd.f32 %v642_v1, %v279_v11  ;;  %v281_v23 = vmul.f32 %v630_v0, %v242_v7  ;;  %v386_v28 = vsel %vm361_vm0, %v561_v12, 0.0 }
  0x29   : > { %445 = vst [vmem:[%s676_s5 + $0x98] sm:$0xff] %v413_v14  ;;  %v415_v26 = vadd.f32 %v383_v10, %v317_v15  ;;  %v319_v27 = vadd.f32 %v642_v1, %v280_v17  ;;  %v282_v29 = vmul.f32 %v630_v0, %v243_v13  ;;  %v387_v34 = vsel %vm361_vm0, %v562_v18, 0.0 }
  0x2a   : > { %446 = vst [vmem:[%s676_s5 + $0xa0] sm:$0xff] %v414_v20  ;;  %v416_v32 = vadd.f32 %v384_v16, %v318_v21  ;;  %v320_v33 = vadd.f32 %v642_v1, %v281_v23  ;;  %v283_v35 = vmul.f32 %v630_v0, %v244_v19  ;;  %v388_v40 = vsel %vm361_vm0, %v563_v24, 0.0 }
  0x2b   : > { %447 = vst [vmem:[%s676_s5 + $0xa8] sm:$0xff] %v415_v26  ;;  %v417_v38 = vadd.f32 %v385_v22, %v319_v27  ;;  %v321_v39 = vadd.f32 %v642_v1, %v282_v29  ;;  %v284_v41 = vmul.f32 %v630_v0, %v245_v25  ;;  %v389_v46 = vsel %vm361_vm0, %v564_v30, 0.0 }
  0x2c   : > { %448 = vst [vmem:[%s676_s5 + $0xb0] sm:$0xff] %v416_v32  ;;  %v418_v44 = vadd.f32 %v386_v28, %v320_v33  ;;  %v322_v45 = vadd.f32 %v642_v1, %v283_v35  ;;  %v285_v47 = vmul.f32 %v630_v0, %v246_v31  ;;  %v390_v52 = vsel %vm361_vm0, %v565_v36, 0.0 }
  0x2d   : > { %449 = vst [vmem:[%s676_s5 + $0xb8] sm:$0xff] %v417_v38  ;;  %v419_v50 = vadd.f32 %v387_v34, %v321_v39  ;;  %v323_v51 = vadd.f32 %v642_v1, %v284_v41  ;;  %v286_v53 = vmul.f32 %v630_v0, %v247_v37  ;;  %v391_v57 = vsel %vm361_vm0, %v566_v42, 0.0 }
  0x2e   : > { %450 = vst [vmem:[%s676_s5 + $0xc0] sm:$0xff] %v418_v44  ;;  %v420_v55 = vadd.f32 %v388_v40, %v322_v45  ;;  %v324_v56 = vadd.f32 %v642_v1, %v285_v47  ;;  %v287_v58 = vmul.f32 %v630_v0, %v248_v43  ;;  %v392_v61 = vsel %vm361_vm0, %v567_v48, 0.0 }
  0x2f   : > { %451 = vst [vmem:[%s676_s5 + $0xc8] sm:$0xff] %v419_v50  ;;  %v421_v59 = vadd.f32 %v389_v46, %v323_v51  ;;  %v325_v60 = vadd.f32 %v642_v1, %v286_v53  ;;  %v288_v62 = vmul.f32 %v630_v0, %v249_v49  ;;  %v393_v3 = vsel %vm361_vm0, %v568_v54, 0.0 }
  0x30   : > { %452 = vst [vmem:[%s676_s5 + $0xd0] sm:$0xff] %v420_v55  ;;  %v422_v63 = vadd.f32 %v390_v52, %v324_v56  ;;  %v326_v2 = vadd.f32 %v642_v1, %v287_v58 }
  0x31   : > { %453 = vst [vmem:[%s676_s5 + $0xd8] sm:$0xff] %v421_v59  ;;  %v423_v4 = vadd.f32 %v391_v57, %v325_v60  ;;  %v327_v5 = vadd.f32 %v642_v1, %v288_v62 }
  0x32   : > { %454 = vst [vmem:[%s676_s5 + $0xe0] sm:$0xff] %v422_v63  ;;  %v424_v6 = vadd.f32 %v392_v61, %v326_v2 }
  0x33   : > { %455 = vst [vmem:[%s676_s5 + $0xe8] sm:$0xff] %v423_v4  ;;  %v425_v7 = vadd.f32 %v393_v3, %v327_v5 }
  0x34   : > { %456 = vst [vmem:[%s676_s5 + $0xf0] sm:$0xff] %v424_v6 }
  0x35   : > { %457 = vst [vmem:[%s676_s5 + $0xf8] sm:$0xff] %v425_v7 }
  0x36 PF: > { %s14_s15 = sadd.s32 1, %s588_s15  }
  0x37   : > { %p11_p4 = scmp.ge.s32.totalorder %s14_s15, 4  }
  0x39   :  { %13 = sbr.rel (!%p11_p4) target bundleno = 1 (0x1), region = 70 }

// kernel: residual_block.2
= control target key start
LH: loop header
LB: loop body
LE: loop exit
PB: predicated region body
PF: predicated region fallthrough
CT: control target
= control target key end

     0   :  { %s2719_s12 = smov 0   ;;  %s3993_s0 = inlined_call_operand.vmem [shape: f32[2,18,18,4], index: 0, kind: input, shape index: {}]   ;;  %s3994_s1 = inlined_call_operand.vmem [shape: f32[36,128], index: 1, kind: input, shape index: {}]   ;;  %s3995_s2 = inlined_call_operand.vmem [shape: f32[2,256,128], index: 2, kind: output, shape index: {0}]   ;;  %s3996_s3 = inlined_call_operand.vmem [shape: f32[2,8,128], index: 3, kind: output, shape index: {1}]  }
   0x1 LB: > { %s2320_s13 = sadd.s32 4294967295, %s2689_s12   ;;  %p2324_p0 = scmp.ge.s32.totalorder %s2689_s12, 1  ;;  %s2689_s12 = sphi %s2719_s12, %s14_s12  }
   0x2   : > { %p140_p1 = scmp.lt.s32.totalorder %s2689_s12, 3 }
   0x4   : > { %p141_p2 = pnand %p2324_p0, %p140_p1 }
   0x6   : > { %144 = sbr.rel (%p141_p2) target bundleno = 879 (0x36f), region = 28 }
   0xd   : > { %p168_p3 = scmp.lt.s32.totalorder %s2320_s13, 1  ;;  %s2691_s18 = smov 4   ;;  %vm1496_vm0 = vcmask 31744   ;;  %vm1862_vm1 = vcmask 1043456   ;;  %vm1529_vm2 = vcmask 64512   ;;  %vm1562_vm3 = vcmask 97280  }
   0xe   : > { %s2692_s19 = smov 8   ;;  %s2693_s20 = smov 12   ;;  %vm1595_vm4 = vcmask 130048   ;;  %vm1628_vm5 = vcmask 162816   ;;  %vm1661_vm6 = vcmask 195584   ;;  %vm1694_vm7 = vcmask 228352  }
   0xf   : > { %s4059_s13 = smov (!%p168_p3, %s2320_s13), 1  ;;  %s2694_s25 = smov 16   ;;  %vm1727_vm8 = vcmask 261120   ;;  %vm1765_vm9 = vcmask 293888   ;;  %vm2229_vm10 = vcmask 1040384   ;;  %vm2231_vm11 = vcmask 1041408  }
  0x10   : > { %s2666_s14 = smul.u32 432, %s4059_s13  ;;  %s2695_s26 = smov 20  }
  0x11   : > { %s2696_s4 = smov 24   ;;  %s2697_s7 = smov 28  }
  0x12   : > { %s2733_s17 = scalar_lea.vmem %s3993_s0, %s2666_s14  ;;  %s2698_s8 = smov 32  }
  0x13   : > { %v2736_v0 = vld [vmem:[%s2733_s17 + $0x19] sm:$0xff]  ;;  %v214_v1 = vld [vmem:[%s2733_s17 + $0x1] sm:$0xff]  ;;  %v215_v3 = vld [vmem:[%s2733_s17 + $0x9] sm:$0xff]  ;;  %s2556_s9 = sshll.u32 %s4059_s13, 8  ;;  %s2328_s15 = sshll.u32 %s4059_s13, 3 }
  0x14   : > { %508 = vrot.lane.b32.xlu1 %v2736_v0, %s2691_s18  ;;  %504 = vrot.lane.b32.xlu0 %v214_v1, %s2691_s18  ;;  %v2743_v2 = vld [vmem:[%s2733_s17 + $0x21] sm:$0xff]  ;;  %v2750_v4 = vld [vmem:[%s2733_s17 + $0x39] sm:$0xff]  ;;  %s3859_s14 = scalar_lea.vmem %s3995_s2, %s2556_s9 }
  0x15   : > { %v2753_v5 = vld [vmem:[%s2733_s17 + $0x31] sm:$0xff]  ;;  %v2763_v7 = vld [vmem:[%s2733_s17 + $0x49] sm:$0xff]  ;;  %v2773_v9 = vld [vmem:[%s2733_s17 + $0x61] sm:$0xff] }
  0x16   : > { %v2760_v6 = vld [vmem:[%s2733_s17 + $0x51] sm:$0xff]  ;;  %v2770_v8 = vld [vmem:[%s2733_s17 + $0x69] sm:$0xff]  ;;  %v2780_v10 = vld [vmem:[%s2733_s17 + $0x81] sm:$0xff] }
  0x17   : > { %v2783_v11 = vld [vmem:[%s2733_s17 + $0x79] sm:$0xff]  ;;  %v2793_v13 = vld [vmem:[%s2733_s17 + $0x91] sm:$0xff]  ;;  %v2803_v15 = vld [vmem:[%s2733_s17 + $0xa9] sm:$0xff] }
  0x18   : > { %510 = vrot.lane.b32.xlu1 %v2743_v2, %s2691_s18  ;;  %506 = vrot.lane.b32.xlu0 %v215_v3, %s2691_s18  ;;  %v2790_v12 = vld [vmem:[%s2733_s17 + $0x99] sm:$0xff]  ;;  %v2800_v14 = vld [vmem:[%s2733_s17 + $0xb1] sm:$0xff] }
  0x19   : > { %v231_v16 = vld [vmem:[%s2733_s17 + $0xc9] sm:$0xff]  ;;  %v2811_v17 = vld [vmem:[%s2733_s17 + $0xc1] sm:$0xff]  ;;  %v232_v19 = vld [vmem:[%s2733_s17 + $0xd9] sm:$0xff] }
  0x1a   : > { %4012 = vst [vmem:[#allocation2_spill] sm:$0xff] %v2811_v17  ;;  %v233_v18 = vld [vmem:[%s2733_s17 + $0xe1] sm:$0xff]  ;;  %v235_v20 = vld [vmem:[%s2733_s17 + $0xf9] sm:$0xff]  ;;  %v234_v21 = vld [vmem:[%s2733_s17 + $0xf1] sm:$0xff] }
  0x1b   : > { %v237_v22 = vld [vmem:[%s2733_s17 + $0x111] sm:$0xff]  ;;  %v236_v23 = vld [vmem:[%s2733_s17 + $0x109] sm:$0xff]  ;;  %v238_v25 = vld [vmem:[%s2733_s17 + $0x121] sm:$0xff] }
  0x1c   : > { %514 = vrot.lane.b32.xlu1 %v2750_v4, %s2691_s18  ;;  %512 = vrot.lane.b32.xlu0 %v2753_v5, %s2691_s18  ;;  %v239_v24 = vld [vmem:[%s2733_s17 + $0x129] sm:$0xff]  ;;  %v241_v26 = vld [vmem:[%s2733_s17 + $0x141] sm:$0xff] }
  0x1d   : > { %v240_v27 = vld [vmem:[%s2733_s17 + $0x139] sm:$0xff]  ;;  %v242_v29 = vld [vmem:[%s2733_s17 + $0x151] sm:$0xff]  ;;  %v244_v31 = vld [vmem:[%s2733_s17 + $0x169] sm:$0xff] }
  0x1e   : > { %v243_v28 = vld [vmem:[%s2733_s17 + $0x159] sm:$0xff]  ;;  %v245_v30 = vld [vmem:[%s2733_s17 + $0x171] sm:$0xff]  ;;  %v246_v33 = vld [vmem:[%s2733_s17 + $0x2] sm:$0xff] }
  0x1f   : > { %v247_v32 = vld [vmem:[%s2733_s17 + $0xa] sm:$0xff]  ;;  %v2849_v34 = vld [vmem:[%s2733_s17 + $0x22] sm:$0xff]  ;;  %v2852_v35 = vld [vmem:[%s2733_s17 + $0x1a] sm:$0xff] }
  0x20   : > { %518 = vrot.lane.b32.xlu1 %v2760_v6, %s2691_s18  ;;  %516 = vrot.lane.b32.xlu0 %v2763_v7, %s2691_s18  ;;  %v2859_v36 = vld [vmem:[%s2733_s17 + $0x3a] sm:$0xff]  ;;  %v2862_v37 = vld [vmem:[%s2733_s17 + $0x32] sm:$0xff] }
  0x21   : > { %v2869_v38 = vld [vmem:[%s2733_s17 + $0x52] sm:$0xff]  ;;  %v2872_v39 = vld [vmem:[%s2733_s17 + $0x4a] sm:$0xff]  ;;  %v2882_v41 = vld [vmem:[%s2733_s17 + $0x62] sm:$0xff] }
  0x22   : > { %v2879_v40 = vld [vmem:[%s2733_s17 + $0x6a] sm:$0xff]  ;;  %v2889_v42 = vld [vmem:[%s2733_s17 + $0x82] sm:$0xff]  ;;  %v2892_v43 = vld [vmem:[%s2733_s17 + $0x7a] sm:$0xff] }
  0x23   : > { %v2899_v44 = vld [vmem:[%s2733_s17 + $0x9a] sm:$0xff]  ;;  %v2902_v45 = vld [vmem:[%s2733_s17 + $0x92] sm:$0xff]  ;;  %v2912_v47 = vld [vmem:[%s2733_s17 + $0xaa] sm:$0xff] }
  0x24   : > { %522 = vrot.lane.b32.xlu1 %v2770_v8, %s2691_s18  ;;  %520 = vrot.lane.b32.xlu0 %v2773_v9, %s2691_s18  ;;  %v2909_v46 = vld [vmem:[%s2733_s17 + $0xb2] sm:$0xff]  ;;  %v2919_v48 = vld [vmem:[%s2733_s17 + $0xca] sm:$0xff] }
  0x25   : > { %4013 = vst [vmem:[#allocation3_spill] sm:$0xff] %v2919_v48  ;;  %v2922_v49 = vld [vmem:[%s2733_s17 + $0xc2] sm:$0xff]  ;;  %v2932_v51 = vld [vmem:[%s2733_s17 + $0xda] sm:$0xff]  ;;  %v266_v53 = vld [vmem:[%s2733_s17 + $0xf2] sm:$0xff] }
  0x26   : > { %4014 = vst [vmem:[#allocation4_spill] sm:$0xff] %v2922_v49  ;;  %v2929_v50 = vld [vmem:[%s2733_s17 + $0xe2] sm:$0xff]  ;;  %4016 = vst [vmem:[#allocation6_spill] sm:$0xff] %v2932_v51  ;;  %v267_v52 = vld [vmem:[%s2733_s17 + $0xfa] sm:$0xff] }
  0x27   : > { %4015 = vst [vmem:[#allocation5_spill] sm:$0xff] %v2929_v50  ;;  %v269_v54 = vld [vmem:[%s2733_s17 + $0x112] sm:$0xff]  ;;  %v268_v55 = vld [vmem:[%s2733_s17 + $0x10a] sm:$0xff]  ;;  %v270_v57 = vld [vmem:[%s2733_s17 + $0x122] sm:$0xff] }
  0x28   : > { %526 = vrot.lane.b32.xlu1 %v2780_v10, %s2691_s18  ;;  %524 = vrot.lane.b32.xlu0 %v2783_v11, %s2691_s18  ;;  %v271_v56 = vld [vmem:[%s2733_s17 + $0x12a] sm:$0xff]  ;;  %v273_v58 = vld [vmem:[%s2733_s17 + $0x142] sm:$0xff] }
  0x29   : > { %v272_v59 = vld [vmem:[%s2733_s17 + $0x13a] sm:$0xff]  ;;  %v274_v63 = vld [vmem:[%s2733_s17 + $0x152] sm:$0xff] }
  0x2a   : > { %v275_v62 = vld [vmem:[%s2733_s17 + $0x15a] sm:$0xff] }
  0x2c   : > { %530 = vrot.lane.b32.xlu1 %v2790_v12, %s2691_s18  ;;  %528 = vrot.lane.b32.xlu0 %v2793_v13, %s2691_s18 }
  0x30   : > { %534 = vrot.lane.b32.xlu1 %v2800_v14, %s2691_s18  ;;  %532 = vrot.lane.b32.xlu0 %v2803_v15, %s2691_s18 }
  0x34   : > { %538 = vrot.lane.b32.xlu1 %v231_v16, %s2691_s18  ;;  %536 = vrot.lane.b32.xlu0 %v2811_v17, %s2691_s18  ;;  %v277_v16 = vld [vmem:[%s2733_s17 + $0x172] sm:$0xff] }
  0x38   : > { %542 = vrot.lane.b32.xlu1 %v233_v18, %s2691_s18  ;;  %540 = vrot.lane.b32.xlu0 %v232_v19, %s2691_s18  ;;  %v276_v18 = vld [vmem:[%s2733_s17 + $0x16a] sm:$0xff] }
  0x3c   : > { %546 = vrot.lane.b32.xlu1 %v235_v20, %s2691_s18  ;;  %544 = vrot.lane.b32.xlu0 %v234_v21, %s2691_s18  ;;  %v2975_v21 = vld [vmem:[%s2733_s17 + $0x50] sm:$0xff] }
  0x40   : > { %550 = vrot.lane.b32.xlu1 %v237_v22, %s2691_s18  ;;  %548 = vrot.lane.b32.xlu0 %v236_v23, %s2691_s18 }
  0x44   : > { %554 = vrot.lane.b32.xlu1 %v239_v24, %s2691_s18  ;;  %552 = vrot.lane.b32.xlu0 %v238_v25, %s2691_s18  ;;  %v2980_v24 = vld [vmem:[%s2733_s17 + $0x18] sm:$0xff]  ;;  %v2983_v25 = vld [vmem:[%s2733_s17 + $0x20] sm:$0xff] }
  0x45   : > { %4022 = vst [vmem:[#allocation12_spill] sm:$0xff] %v2980_v24  ;;  %4023 = vst [vmem:[#allocation13_spill] sm:$0xff] %v2983_v25 }
  0x48   : > { %558 = vrot.lane.b32.xlu1 %v241_v26, %s2691_s18  ;;  %556 = vrot.lane.b32.xlu0 %v240_v27, %s2691_s18 }
  0x4c   : > { %562 = vrot.lane.b32.xlu1 %v243_v28, %s2691_s18  ;;  %560 = vrot.lane.b32.xlu0 %v242_v29, %s2691_s18  ;;  %v2998_v29 = vld [vmem:[%s2733_s17 + $0x38] sm:$0xff] }
  0x4d   : > { %4024 = vst [vmem:[#allocation14_spill] sm:$0xff] %v2998_v29 }
  0x50   : > { %566 = vrot.lane.b32.xlu1 %v245_v30, %s2691_s18  ;;  %564 = vrot.lane.b32.xlu0 %v244_v31, %s2691_s18  ;;  %v3001_v30 = vld [vmem:[%s2733_s17 + $0x30] sm:$0xff]  ;;  %s181_s18 = scalar_lea.vmem %s3996_s3, %s2328_s15 }
  0x51   : > { %4025 = vst [vmem:[#allocation15_spill] sm:$0xff] %v3001_v30 }
  0x54   : > { %634 = vrot.lane.b32.xlu1 %v247_v32, %s2692_s19  ;;  %632 = vrot.lane.b32.xlu0 %v246_v33, %s2692_s19  ;;  %v3012_v33 = vld [vmem:[%s2733_s17 + $0x48] sm:$0xff] }
  0x55   : > { %4026 = vst [vmem:[#allocation16_spill] sm:$0xff] %v3012_v33 }
  0x58   : > { %638 = vrot.lane.b32.xlu1 %v2849_v34, %s2692_s19  ;;  %636 = vrot.lane.b32.xlu0 %v2852_v35, %s2692_s19 }
  0x5c   : > { %642 = vrot.lane.b32.xlu1 %v2859_v36, %s2692_s19  ;;  %640 = vrot.lane.b32.xlu0 %v2862_v37, %s2692_s19 }
  0x60   : > { %646 = vrot.lane.b32.xlu1 %v2869_v38, %s2692_s19  ;;  %644 = vrot.lane.b32.xlu0 %v2872_v39, %s2692_s19 }
  0x64   : > { %650 = vrot.lane.b32.xlu1 %v2879_v40, %s2692_s19  ;;  %648 = vrot.lane.b32.xlu0 %v2882_v41, %s2692_s19 }
  0x68   : > { %654 = vrot.lane.b32.xlu1 %v2889_v42, %s2692_s19  ;;  %652 = vrot.lane.b32.xlu0 %v2892_v43, %s2692_s19 }
  0x6c   : > { %658 = vrot.lane.b32.xlu1 %v2899_v44, %s2692_s19  ;;  %656 = vrot.lane.b32.xlu0 %v2902_v45, %s2692_s19 }
  0x70   : > { %662 = vrot.lane.b32.xlu1 %v2909_v46, %s2692_s19  ;;  %660 = vrot.lane.b32.xlu0 %v2912_v47, %s2692_s19 }
  0x74   : > { %666 = vrot.lane.b32.xlu1 %v2919_v48, %s2692_s19  ;;  %664 = vrot.lane.b32.xlu0 %v2922_v49, %s2692_s19 }
  0x78   : > { %670 = vrot.lane.b32.xlu1 %v2929_v50, %s2692_s19  ;;  %668 = vrot.lane.b32.xlu0 %v2932_v51, %s2692_s19  ;;  %v3065_v50 = vld [vmem:[%s2733_s17 + $0xb0] sm:$0xff] }
  0x7c   : > { %674 = vrot.lane.b32.xlu1 %v267_v52, %s2692_s19  ;;  %672 = vrot.lane.b32.xlu0 %v266_v53, %s2692_s19 }
  0x80   : > { %678 = vrot.lane.b32.xlu1 %v269_v54, %s2692_s19  ;;  %676 = vrot.lane.b32.xlu0 %v268_v55, %s2692_s19  ;;  %v3023_v54 = vld [vmem:[%s2733_s17 + $0x68] sm:$0xff]  ;;  %v3026_v55 = vld [vmem:[%s2733_s17 + $0x60] sm:$0xff] }
  0x84   : > { %682 = vrot.lane.b32.xlu1 %v271_v56, %s2692_s19  ;;  %680 = vrot.lane.b32.xlu0 %v270_v57, %s2692_s19 }
  0x86   : > { %v2952_v60 = vpop.permute.xlu1 %508  ;;  %v2954_v61 = vpop.permute.xlu0 %504 }
  0x87   : > { %4017 = vst [vmem:[#allocation7_spill] sm:$0xff] %v2952_v60 }
  0x88   : > { %686 = vrot.lane.b32.xlu1 %v273_v58, %s2692_s19  ;;  %684 = vrot.lane.b32.xlu0 %v272_v59, %s2692_s19  ;;  %v3037_v58 = vld [vmem:[%s2733_s17 + $0x80] sm:$0xff]  ;;  %v3040_v59 = vld [vmem:[%s2733_s17 + $0x78] sm:$0xff] }
  0x8a   : > { %v2960_v1 = vpop.permute.xlu1 %510  ;;  %v2962_v3 = vpop.permute.xlu0 %506 }
  0x8b   : > { %4018 = vst [vmem:[#allocation8_spill] sm:$0xff] %v2960_v1  ;;  %v1761_v1 = vld [vmem:[%s3994_s1 + $0x8] sm:$0xff] }
  0x8c   : > { %690 = vrot.lane.b32.xlu1 %v275_v62, %s2692_s19  ;;  %688 = vrot.lane.b32.xlu0 %v274_v63, %s2692_s19 }
  0x8e   : > { %v2968_v19 = vpop.permute.xlu1 %514  ;;  %v2970_v20 = vpop.permute.xlu0 %512 }
  0x8f   : > { %4019 = vst [vmem:[#allocation9_spill] sm:$0xff] %v2968_v19  ;;  %4020 = vst [vmem:[#allocation10_spill] sm:$0xff] %v2970_v20  ;;  %v3068_v19 = vld [vmem:[%s2733_s17 + $0xa8] sm:$0xff] }
  0x90   : > { %694 = vrot.lane.b32.xlu1 %v277_v16, %s2692_s19  ;;  %692 = vrot.lane.b32.xlu0 %v276_v18, %s2692_s19  ;;  %v3051_v16 = vld [vmem:[%s2733_s17 + $0x98] sm:$0xff]  ;;  %v3054_v18 = vld [vmem:[%s2733_s17 + $0x90] sm:$0xff] }
  0x92   : > { %v519_v22 = vpop.permute.xlu1 %518  ;;  %v2977_v23 = vpop.permute.xlu0 %516 }
  0x93   : > { %4021 = vst [vmem:[#allocation11_spill] sm:$0xff] %v2977_v23  ;;  %v2987_v26 = vsel %vm1496_vm0, %v2975_v21, %v519_v22 }
  0x94   : > { %762 = vrot.lane.b32.xlu1 %v2983_v25, %s2693_s20  ;;  %760 = vrot.lane.b32.xlu0 %v2980_v24, %s2693_s20  ;;  %v1760_v25 = vld [vmem:[%s3994_s1] sm:$0xff] }
  0x95   : > { %v2652_v48 = vpack.c.bf16 %v1761_v1, %v1760_v25 }
  0x96   : > { %v2993_v27 = vpop.permute.xlu1 %522  ;;  %v2995_v28 = vpop.permute.xlu0 %520 }
  0x97   : > { %2653 = vmatprep.subr.bf16.mxu0 %v2652_v48  ;;  %2660 = vmatprep.subr.bf16.mxu1 %v2652_v48 }
  0x98   : > { %766 = vrot.lane.b32.xlu1 %v2998_v29, %s2693_s20  ;;  %764 = vrot.lane.b32.xlu0 %v3001_v30, %s2693_s20 }
  0x99   : > { %2655 = vmatpush3.bf16.msra.mxu0 %v2652_v48  ;;  %2663 = vmatpush3.bf16.msra.mxu1 %v2652_v48 }
  0x9a   : > { %v3007_v31 = vpop.permute.xlu1 %526  ;;  %v3009_v32 = vpop.permute.xlu0 %524 }
  0x9c   : > { %770 = vrot.lane.b32.xlu1 %v2975_v21, %s2693_s20  ;;  %768 = vrot.lane.b32.xlu0 %v3012_v33, %s2693_s20 }
  0x9e   : > { %v3018_v52 = vpop.permute.xlu1 %530  ;;  %v3020_v53 = vpop.permute.xlu0 %528 }
  0xa0   : > { %774 = vrot.lane.b32.xlu1 %v3023_v54, %s2693_s20  ;;  %772 = vrot.lane.b32.xlu0 %v3026_v55, %s2693_s20 }
  0xa2   : > { %v3032_v56 = vpop.permute.xlu1 %534  ;;  %v3034_v57 = vpop.permute.xlu0 %532 }
  0xa4   : > { %778 = vrot.lane.b32.xlu1 %v3037_v58, %s2693_s20  ;;  %776 = vrot.lane.b32.xlu0 %v3040_v59, %s2693_s20 }
  0xa6   : > { %v3046_v62 = vpop.permute.xlu1 %538  ;;  %v3048_v63 = vpop.permute.xlu0 %536 }
  0xa8   : > { %782 = vrot.lane.b32.xlu1 %v3051_v16, %s2693_s20  ;;  %780 = vrot.lane.b32.xlu0 %v3054_v18, %s2693_s20 }
  0xaa   : > { %v3060_v22 = vpop.permute.xlu1 %542  ;;  %v3062_v23 = vpop.permute.xlu0 %540 }
  0xac   : > { %786 = vrot.lane.b32.xlu1 %v3065_v50, %s2693_s20  ;;  %784 = vrot.lane.b32.xlu0 %v3068_v19, %s2693_s20 }
  0xae   : > { %v3074_v51 = vpop.permute.xlu1 %546  ;;  %v3076_v20 = vpop.permute.xlu0 %544 }
  0xb0   : > { %890 = vrot.lane.b32.xlu1 %v2743_v2, %s2694_s25  ;;  %888 = vrot.lane.b32.xlu0 %v2736_v0, %s2694_s25  ;;  %v1762_v0 = vld [vmem:[%s3994_s1 + $0x10] sm:$0xff]  ;;  %v1763_v2 = vld [vmem:[%s3994_s1 + $0x18] sm:$0xff] }
  0xb1   : > { %v2656_v1 = vpack.c.bf16 %v1763_v2, %v1762_v0 }
  0xb2   : > { %v3088_v24 = vpop.permute.xlu1 %550  ;;  %v3090_v60 = vpop.permute.xlu0 %548 }
  0xb3   : > { %2657 = vmatprep.subr.bf16.mxu0 %v2656_v1  ;;  %2661 = vmatprep.subr.bf16.mxu1 %v2656_v1 }
  0xb4   : > { %1018 = vrot.lane.b32.xlu1 %v2849_v34, %s2695_s26  ;;  %1016 = vrot.lane.b32.xlu0 %v2852_v35, %s2695_s26  ;;  %v1764_v34 = vld [vmem:[%s3994_s1 + $0x20] sm:$0xf] }
  0xb5   : > { %2659 = vmatpush3.bf16.msra.mxu0 %v2656_v1  ;;  %2664 = vmatpush3.bf16.msra.mxu1 %v2656_v1 }
  0xb6   : > { %v3102_v25 = vpop.permute.xlu1 %554  ;;  %v3104_v49 = vpop.permute.xlu0 %552  ;;  %2602 = vmatprep.subr.msk.mxu0 %vm1862_vm1, %v1764_v34  ;;  %2662 = vmatprep.subr.msk.mxu1 %vm1862_vm1, %v1764_v34 }
  0xb8   : > { %1146 = vrot.lane.b32.xlu1 %v2998_v29, %s2696_s4  ;;  %1144 = vrot.lane.b32.xlu0 %v3001_v30, %s2696_s4 }
  0xb9   : > { %2603 = vmatpush3.msk.msra.mxu0 %vm1862_vm1, %v1764_v34  ;;  %2665 = vmatpush3.msk.msra.mxu1 %vm1862_vm1, %v1764_v34 }
  0xba   : > { %v3113_v35 = vpop.permute.xlu1 %558  ;;  %v3115_v48 = vpop.permute.xlu0 %556 }
  0xbc   : > { %892 = vrot.lane.b32.xlu1 %v2753_v5, %s2694_s25  ;;  %1272 = vrot.lane.b32.xlu0 %v2753_v5, %s2697_s7 }
  0xbe   : > { %v3121_v0 = vpop.permute.xlu1 %562  ;;  %v3123_v2 = vpop.permute.xlu0 %560 }
  0xc0   : > { %1400 = vrot.lane.b32.xlu1 %v2862_v37, %s2698_s8  ;;  %1274 = vrot.lane.b32.xlu0 %v2750_v4, %s2697_s7 }
  0xc2   : > { %v3129_v1 = vpop.permute.xlu1 %566  ;;  %v3131_v29 = vpop.permute.xlu0 %564 }
  0xc4   : > { %1020 = vrot.lane.b32.xlu1 %v2862_v37, %s2695_s26  ;;  %894 = vrot.lane.b32.xlu0 %v2750_v4, %s2694_s25 }
  0xc6   : > { %v3137_v5 = vpop.permute.xlu1 %634  ;;  %v3139_v34 = vpop.permute.xlu0 %632 }
  0xc8   : > { %1022 = vrot.lane.b32.xlu1 %v2859_v36, %s2695_s26  ;;  %1402 = vrot.lane.b32.xlu0 %v2859_v36, %s2698_s8 }
  0xca   : > { %v3145_v30 = vpop.permute.xlu1 %638  ;;  %v3147_v17 = vpop.permute.xlu0 %636 }
  0xcb   : > { %4027 = vst [vmem:[#allocation17_spill] sm:$0xff] %v3145_v30 }
  0xcc   : > { %1150 = vrot.lane.b32.xlu1 %v2975_v21, %s2696_s4  ;;  %1148 = vrot.lane.b32.xlu0 %v3012_v33, %s2696_s4  ;;  %v1506_v33 = vsel %vm1496_vm0, %v3023_v54, %v2993_v27  ;;  %v1508_v27 = vsel %vm1496_vm0, %v3037_v58, %v3007_v31 }
  0xce   : > { %v3153_v4 = vpop.permute.xlu1 %642  ;;  %v3155_v37 = vpop.permute.xlu0 %640 }
  0xcf   : > { %4028 = vst [vmem:[#allocation18_spill] sm:$0xff] %v3153_v4  ;;  %4029 = vst [vmem:[#allocation19_spill] sm:$0xff] %v3155_v37 }
  0xd0   : > { %896 = vrot.lane.b32.xlu1 %v2763_v7, %s2694_s25  ;;  %1276 = vrot.lane.b32.xlu0 %v2763_v7, %s2697_s7  ;;  %v1505_v7 = vsel %vm1496_vm0, %v3026_v55, %v2995_v28  ;;  %v1507_v28 = vsel %vm1496_vm0, %v3040_v59, %v3009_v32 }
  0xd2   : > { %v647_v36 = vpop.permute.xlu1 %646  ;;  %v3161_v30 = vpop.permute.xlu0 %644 }
  0xd3   : > { %4030 = vst [vmem:[#allocation20_spill] sm:$0xff] %v3161_v30  ;;  %v3165_v21 = vsel %vm1529_vm2, %v2987_v26, %v647_v36 }
  0xd4   : > { %1404 = vrot.lane.b32.xlu1 %v2872_v39, %s2698_s8  ;;  %1278 = vrot.lane.b32.xlu0 %v2760_v6, %s2697_s7 }
  0xd6   : > { %v651_v4 = vpop.permute.xlu1 %650  ;;  %v649_v30 = vpop.permute.xlu0 %648 }
  0xd7   : > { %v3178_v37 = vsel %vm1529_vm2, %v1506_v33, %v651_v4  ;;  %v3181_v26 = vsel %vm1529_vm2, %v1505_v7, %v649_v30 }
  0xd8   : > { %1024 = vrot.lane.b32.xlu1 %v2872_v39, %s2695_s26  ;;  %898 = vrot.lane.b32.xlu0 %v2760_v6, %s2694_s25  ;;  %v1510_v6 = vsel %vm1496_vm0, %v3051_v16, %v3018_v52  ;;  %v1509_v39 = vsel %vm1496_vm0, %v3054_v18, %v3020_v53  ;;  %v1511_v52 = vsel %vm1496_vm0, %v3068_v19, %v3034_v57 }
  0xda   : > { %v655_v36 = vpop.permute.xlu1 %654  ;;  %v653_v33 = vpop.permute.xlu0 %652 }
  0xdb   : > { %v3194_v4 = vsel %vm1529_vm2, %v1508_v27, %v655_v36  ;;  %v3197_v30 = vsel %vm1529_vm2, %v1507_v28, %v653_v33  ;;  %v3226_v36 = vld [vmem:[%s2733_s17 + $0xc8] sm:$0xff]  ;;  %v3229_v33 = vld [vmem:[%s2733_s17 + $0xc0] sm:$0xff] }
  0xdc   : > { %1026 = vrot.lane.b32.xlu1 %v2869_v38, %s2695_s26  ;;  %1406 = vrot.lane.b32.xlu0 %v2869_v38, %s2698_s8  ;;  %v1512_v38 = vsel %vm1496_vm0, %v3065_v50, %v3032_v56  ;;  %v1514_v56 = vsel %vm1496_vm0, %v3226_v36, %v3046_v62  ;;  %v1513_v57 = vsel %vm1496_vm0, %v3229_v33, %v3048_v63 }
  0xde   : > { %v659_v31 = vpop.permute.xlu1 %658  ;;  %v657_v32 = vpop.permute.xlu0 %656 }
  0xdf   : > { %v3210_v7 = vsel %vm1529_vm2, %v1510_v6, %v659_v31  ;;  %v3213_v27 = vsel %vm1529_vm2, %v1509_v39, %v657_v32  ;;  %v3248_v31 = vld [vmem:[%s2733_s17 + $0xe0] sm:$0xff]  ;;  %v3251_v32 = vld [vmem:[%s2733_s17 + $0xd8] sm:$0xff] }
  0xe0   : > { %1154 = vrot.lane.b32.xlu1 %v3023_v54, %s2696_s4  ;;  %1152 = vrot.lane.b32.xlu0 %v3026_v55, %s2696_s4  ;;  %v1516_v62 = vsel %vm1496_vm0, %v3248_v31, %v3060_v22  ;;  %v1515_v63 = vsel %vm1496_vm0, %v3251_v32, %v3062_v23 }
  0xe2   : > { %v663_v53 = vpop.permute.xlu1 %662  ;;  %v661_v28 = vpop.permute.xlu0 %660 }
  0xe3   : > { %v3232_v54 = vsel %vm1529_vm2, %v1512_v38, %v663_v53  ;;  %v3235_v55 = vsel %vm1529_vm2, %v1511_v52, %v661_v28  ;;  %v3270_v28 = vld [vmem:[%s2733_s17 + $0xf8] sm:$0xff] }
  0xe4   : > { %900 = vrot.lane.b32.xlu1 %v2773_v9, %s2694_s25  ;;  %1280 = vrot.lane.b32.xlu0 %v2773_v9, %s2697_s7  ;;  %v1518_v23 = vsel %vm1496_vm0, %v3270_v28, %v3074_v51 }
  0xe6   : > { %v667_v6 = vpop.permute.xlu1 %666  ;;  %v665_v39 = vpop.permute.xlu0 %664 }
  0xe7   : > { %v3254_v38 = vsel %vm1529_vm2, %v1514_v56, %v667_v6  ;;  %v3257_v9 = vsel %vm1529_vm2, %v1513_v57, %v665_v39  ;;  %v3273_v56 = vld [vmem:[%s2733_s17 + $0xf0] sm:$0xff] }
  0xe8   : > { %1408 = vrot.lane.b32.xlu1 %v2882_v41, %s2698_s8  ;;  %1282 = vrot.lane.b32.xlu0 %v2770_v8, %s2697_s7  ;;  %v1517_v22 = vsel %vm1496_vm0, %v3273_v56, %v3076_v20 }
  0xea   : > { %v671_v52 = vpop.permute.xlu1 %670  ;;  %v669_v53 = vpop.permute.xlu0 %668 }
  0xeb   : > { %v3276_v57 = vsel %vm1529_vm2, %v1516_v62, %v671_v52  ;;  %v3279_v6 = vsel %vm1529_vm2, %v1515_v63, %v669_v53  ;;  %v3292_v63 = vld [vmem:[%s2733_s17 + $0x110] sm:$0xff]  ;;  %v3295_v52 = vld [vmem:[%s2733_s17 + $0x108] sm:$0xff] }
  0xec   : > { %1028 = vrot.lane.b32.xlu1 %v2882_v41, %s2695_s26  ;;  %902 = vrot.lane.b32.xlu0 %v2770_v8, %s2694_s25  ;;  %v1520_v51 = vsel %vm1496_vm0, %v3292_v63, %v3088_v24  ;;  %v1519_v20 = vsel %vm1496_vm0, %v3295_v52, %v3090_v60 }
  0xee   : > { %v675_v39 = vpop.permute.xlu1 %674  ;;  %v673_v62 = vpop.permute.xlu0 %672 }
  0xef   : > { %v3298_v41 = vsel %vm1529_vm2, %v1518_v23, %v675_v39  ;;  %v3301_v8 = vsel %vm1529_vm2, %v1517_v22, %v673_v62  ;;  %v3314_v22 = vld [vmem:[%s2733_s17 + $0x128] sm:$0xff]  ;;  %v3317_v39 = vld [vmem:[%s2733_s17 + $0x120] sm:$0xff] }
  0xf0   : > { %1030 = vrot.lane.b32.xlu1 %v2879_v40, %s2695_s26  ;;  %1410 = vrot.lane.b32.xlu0 %v2879_v40, %s2698_s8  ;;  %v1522_v60 = vsel %vm1496_vm0, %v3314_v22, %v3102_v25  ;;  %v1521_v24 = vsel %vm1496_vm0, %v3317_v39, %v3104_v49 }
  0xf2   : > { %v679_v53 = vpop.permute.xlu1 %678  ;;  %v677_v23 = vpop.permute.xlu0 %676 }
  0xf3   : > { %v3320_v62 = vsel %vm1529_vm2, %v1520_v51, %v679_v53  ;;  %v3323_v40 = vsel %vm1529_vm2, %v1519_v20, %v677_v23  ;;  %v209_v20 = vld [vmem:[%s2733_s17 + $0x140] sm:$0xff]  ;;  %v208_v23 = vld [vmem:[%s2733_s17 + $0x138] sm:$0xff] }
  0xf4   : > { %4031 = vst [vmem:[#allocation21_spill] sm:$0xff] %v3320_v62  ;;  %1158 = vrot.lane.b32.xlu1 %v3037_v58, %s2696_s4  ;;  %1156 = vrot.lane.b32.xlu0 %v3040_v59, %s2696_s4  ;;  %v1524_v49 = vsel %vm1496_vm0, %v209_v20, %v3113_v35  ;;  %v1523_v59 = vsel %vm1496_vm0, %v208_v23, %v3115_v48  ;;  %v213_v23 = vld [vmem:[%s2733_s17 + $0x170] sm:$0xff] }
  0xf6   : > { %v683_v51 = vpop.permute.xlu1 %682  ;;  %v681_v53 = vpop.permute.xlu0 %680 }
  0xf7   : > { %v3338_v62 = vsel %vm1529_vm2, %v1522_v60, %v683_v51  ;;  %v3341_v58 = vsel %vm1529_vm2, %v1521_v24, %v681_v53  ;;  %v211_v51 = vld [vmem:[%s2733_s17 + $0x158] sm:$0xff] }
  0xf8   : > { %4032 = vst [vmem:[#allocation22_spill] sm:$0xff] %v3338_v62  ;;  %904 = vrot.lane.b32.xlu1 %v2783_v11, %s2694_s25  ;;  %1284 = vrot.lane.b32.xlu0 %v2783_v11, %s2697_s7  ;;  %v210_v62 = vld [vmem:[%s2733_s17 + $0x150] sm:$0xff]  ;;  %v1526_v11 = vsel %vm1496_vm0, %v211_v51, %v3121_v0  ;;  %v1528_v0 = vsel %vm1496_vm0, %v213_v23, %v3129_v1 }
  0xf9   : > { %v1525_v35 = vsel %vm1496_vm0, %v210_v62, %v3123_v2 }
  0xfa   : > { %v687_v25 = vpop.permute.xlu1 %686  ;;  %v685_v60 = vpop.permute.xlu0 %684 }
  0xfb   : > { %v3354_v24 = vsel %vm1529_vm2, %v1524_v49, %v687_v25  ;;  %v3357_v53 = vsel %vm1529_vm2, %v1523_v59, %v685_v60  ;;  %v212_v49 = vld [vmem:[%s2733_s17 + $0x168] sm:$0xff] }
  0xfc   : > { %1412 = vrot.lane.b32.xlu1 %v2892_v43, %s2698_s8  ;;  %1286 = vrot.lane.b32.xlu0 %v2780_v10, %s2697_s7  ;;  %v1527_v2 = vsel %vm1496_vm0, %v212_v49, %v3131_v29 }
  0xfe   : > { %v691_v48 = vpop.permute.xlu1 %690  ;;  %v689_v20 = vpop.permute.xlu0 %688 }
  0xff   : > { %v3370_v25 = vsel %vm1529_vm2, %v1526_v11, %v691_v48  ;;  %v3373_v59 = vsel %vm1529_vm2, %v1525_v35, %v689_v20 }
 0x100   : > { %1032 = vrot.lane.b32.xlu1 %v2892_v43, %s2695_s26  ;;  %906 = vrot.lane.b32.xlu0 %v2780_v10, %s2694_s25 }
 0x102   : > { %v695_v62 = vpop.permute.xlu1 %694  ;;  %v693_v60 = vpop.permute.xlu0 %692 }
 0x103   : > { %v3384_v51 = vsel %vm1529_vm2, %v1528_v0, %v695_v62  ;;  %v3387_v11 = vsel %vm1529_vm2, %v1527_v2, %v693_v60  ;;  %v182_v0 = vld [vmem:[%s2733_s17] sm:$0xff] }
 0x104   : > { %4033 = vst [vmem:[#allocation23_spill] sm:$0xff] %v3384_v51  ;;  %4034 = vst [vmem:[#allocation24_spill] sm:$0xff] %v3387_v11  ;;  %1034 = vrot.lane.b32.xlu1 %v2889_v42, %s2695_s26  ;;  %1414 = vrot.lane.b32.xlu0 %v2889_v42, %s2698_s8 }
 0x106   : > { %v3393_v10 = vpop.permute.xlu1 %762  ;;  %v761_v43 = vpop.permute.xlu0 %760 }
 0x108   : > { %1162 = vrot.lane.b32.xlu1 %v3051_v16, %s2696_s4  ;;  %1160 = vrot.lane.b32.xlu0 %v3054_v18, %s2696_s4 }
 0x10a   : > { %v3399_v29 = vpop.permute.xlu1 %766  ;;  %v3401_v1 = vpop.permute.xlu0 %764 }
 0x10c   : > { %908 = vrot.lane.b32.xlu1 %v2793_v13, %s2694_s25  ;;  %1288 = vrot.lane.b32.xlu0 %v2793_v13, %s2697_s7 }
 0x10e   : > { %v3407_v42 = vpop.permute.xlu1 %770  ;;  %v3409_v35 = vpop.permute.xlu0 %768 }
 0x110   : > { %1416 = vrot.lane.b32.xlu1 %v2902_v45, %s2698_s8  ;;  %1290 = vrot.lane.b32.xlu0 %v2790_v12, %s2697_s7 }
 0x112   : > { %v3415_v16 = vpop.permute.xlu1 %774  ;;  %v3417_v18 = vpop.permute.xlu0 %772 }
 0x114   : > { %1036 = vrot.lane.b32.xlu1 %v2902_v45, %s2695_s26  ;;  %910 = vrot.lane.b32.xlu0 %v2790_v12, %s2694_s25 }
 0x116   : > { %v3423_v13 = vpop.permute.xlu1 %778  ;;  %v3425_v48 = vpop.permute.xlu0 %776 }
 0x118   : > { %1038 = vrot.lane.b32.xlu1 %v2899_v44, %s2695_s26  ;;  %1418 = vrot.lane.b32.xlu0 %v2899_v44, %s2698_s8 }
 0x11a   : > { %v3431_v20 = vpop.permute.xlu1 %782  ;;  %v3433_v23 = vpop.permute.xlu0 %780 }
 0x11c   : > { %1166 = vrot.lane.b32.xlu1 %v3065_v50, %s2696_s4  ;;  %1164 = vrot.lane.b32.xlu0 %v3068_v19, %s2696_s4 }
 0x11e   : > { %v3439_v12 = vpop.permute.xlu1 %786  ;;  %v3441_v45 = vpop.permute.xlu0 %784 }
 0x120   : > { %912 = vrot.lane.b32.xlu1 %v2803_v15, %s2694_s25  ;;  %1292 = vrot.lane.b32.xlu0 %v2803_v15, %s2697_s7  ;;  %v1497_v15 = vsel %vm1496_vm0, %v182_v0, %v2954_v61 }
 0x122   : > { %v891_v44 = vpop.permute.xlu1 %890  ;;  %v889_v49 = vpop.permute.xlu0 %888 }
 0x124   : > { %1420 = vrot.lane.b32.xlu1 %v2912_v47, %s2698_s8  ;;  %1294 = vrot.lane.b32.xlu0 %v2800_v14, %s2697_s7 }
 0x126   : > { %v1019_v50 = vpop.permute.xlu1 %1018  ;;  %v1017_v19 = vpop.permute.xlu0 %1016 }
 0x128   : > { %1040 = vrot.lane.b32.xlu1 %v2912_v47, %s2695_s26  ;;  %914 = vrot.lane.b32.xlu0 %v2800_v14, %s2694_s25  ;;  %v1530_v47 = vsel %vm1529_vm2, %v1497_v15, %v3139_v34 }
 0x129   : > { %v1563_v14 = vsel %vm1562_vm3, %v1530_v47, %v761_v43 }
 0x12a   : > { %v1147_v2 = vpop.permute.xlu1 %1146  ;;  %v1145_v62 = vpop.permute.xlu0 %1144  ;;  %v1596_v11 = vsel %vm1595_vm4, %v1563_v14, %v889_v49 }
 0x12b   : > { %v1629_v61 = vsel %vm1628_vm5, %v1596_v11, %v1017_v19  ;;  %v4035_v19 = vld [vmem:[#allocation2_spill] sm:$0xff] }
 0x12c   : > { %1042 = vrot.lane.b32.xlu1 %v2909_v46, %s2695_s26  ;;  %1422 = vrot.lane.b32.xlu0 %v2909_v46, %s2698_s8  ;;  %v183_v46 = vld [vmem:[%s2733_s17 + $0x8] sm:$0xff]  ;;  %v1662_v34 = vsel %vm1661_vm6, %v1629_v61, %v1145_v62 }
 0x12d   : > { %v1498_v11 = vsel %vm1496_vm0, %v183_v46, %v2962_v3 }
 0x12e   : > { %v893_v60 = vpop.permute.xlu1 %892  ;;  %v1273_v51 = vpop.permute.xlu0 %1272 }
 0x12f   : > { %v1695_v43 = vsel %vm1694_vm7, %v1662_v34, %v1273_v51 }
 0x130   : > { %788 = vrot.lane.b32.xlu1 %v3229_v33, %s2693_s20  ;;  %1168 = vrot.lane.b32.xlu0 %v3229_v33, %s2696_s4  ;;  %v1531_v33 = vsel %vm1529_vm2, %v1498_v11, %v3137_v5  ;;  %v2470_v5 = vld [vmem:[%s2733_s17 + $0xc9] sm:$0xff] }
 0x131   : > { %v1564_v51 = vsel %vm1562_vm3, %v1531_v33, %v3393_v10 }
 0x132   : > { %v1401_v0 = vpop.permute.xlu1 %1400  ;;  %v1275_v15 = vpop.permute.xlu0 %1274  ;;  %v1597_v14 = vsel %vm1595_vm4, %v1564_v51, %v891_v44 }
 0x133   : > { %v1728_v49 = vsel %vm1727_vm8, %v1695_v43, %v1401_v0  ;;  %v1630_v3 = vsel %vm1628_vm5, %v1597_v14, %v1019_v50  ;;  %v4036_v0 = vld [vmem:[#allocation4_spill] sm:$0xff] }
 0x134   : > { %1296 = vrot.lane.b32.xlu1 %v4035_v19, %s2697_s7  ;;  %1170 = vrot.lane.b32.xlu0 %v3226_v36, %s2696_s4  ;;  %v1663_v61 = vsel %vm1661_vm6, %v1630_v3, %v1147_v2  ;;  %v4039_v3 = vld [vmem:[#allocation3_spill] sm:$0xff] }
 0x135   : > { %2604 = vmatprep.mubr.msk.f32.mxu0 %vm1765_vm9, %v1728_v49  ;;  %v1696_v46 = vsel %vm1694_vm7, %v1663_v61, %v1275_v15  ;;  %v4037_v49 = vld [vmem:[#allocation7_spill] sm:$0xff] }
 0x136   : > { %v1021_v62 = vpop.permute.xlu1 %1020  ;;  %v895_v47 = vpop.permute.xlu0 %894 }
 0x138   : > { %916 = vrot.lane.b32.xlu1 %v4035_v19, %s2694_s25  ;;  %790 = vrot.lane.b32.xlu0 %v3226_v36, %s2693_s20  ;;  %v4038_v36 = vld [vmem:[#allocation12_spill] sm:$0xff] }
 0x139   : > { %v1499_v2 = vsel %vm1496_vm0, %v4038_v36, %v4037_v49 }
 0x13a   : > { %v1023_v34 = vpop.permute.xlu1 %1022  ;;  %v1403_v43 = vpop.permute.xlu0 %1402  ;;  %v1532_v15 = vsel %vm1529_vm2, %v1499_v2, %v3147_v17 }
 0x13b   : > { %v1729_v10 = vsel %vm1727_vm8, %v1696_v46, %v1403_v43  ;;  %v1565_v11 = vsel %vm1562_vm3, %v1532_v15, %v3401_v1  ;;  %v4040_v43 = vld [vmem:[#allocation8_spill] sm:$0xff] }
 0x13c   : > { %1424 = vrot.lane.b32.xlu1 %v4036_v0, %s2698_s8  ;;  %1298 = vrot.lane.b32.xlu0 %v2470_v5, %s2697_s7  ;;  %v1598_v51 = vsel %vm1595_vm4, %v1565_v11, %v893_v60 }
 0x13d   : > { %2605 = vmatmul.mubr.msk.f32.vlgmr.msra.gmra.mrb[0].mxu0 %vm1765_vm9, %v1729_v10  ;;  %v1631_v14 = vsel %vm1628_vm5, %v1598_v51, %v1021_v62  ;;  %v4041_v10 = vld [vmem:[#allocation13_spill] sm:$0xff] }
 0x13e   : > { %v1151_v44 = vpop.permute.xlu1 %1150  ;;  %v1149_v50 = vpop.permute.xlu0 %1148  ;;  %v1500_v60 = vsel %vm1496_vm0, %v4041_v10, %v4040_v43  ;;  %v4042_v62 = vld [vmem:[#allocation17_spill] sm:$0xff] }
 0x13f   : > { %v1664_v61 = vsel %vm1661_vm6, %v1631_v14, %v1149_v50  ;;  %v2471_v50 = vld [vmem:[%s2733_s17 + $0xd9] sm:$0xff] }
 0x140   : > { %1044 = vrot.lane.b32.xlu1 %v4036_v0, %s2695_s26  ;;  %918 = vrot.lane.b32.xlu0 %v2470_v5, %s2694_s25  ;;  %v1533_v0 = vsel %vm1529_vm2, %v1500_v60, %v4042_v62 }
 0x141   : > { %v1566_v49 = vsel %vm1562_vm3, %v1533_v0, %v3399_v29  ;;  %v2472_v29 = vld [vmem:[%s2733_s17 + $0xe1] sm:$0xff] }
 0x142   : > { %v897_v19 = vpop.permute.xlu1 %896  ;;  %v1277_v33 = vpop.permute.xlu0 %1276  ;;  %v1599_v15 = vsel %vm1595_vm4, %v1566_v49, %v895_v47 }
 0x143   : > { %v1697_v17 = vsel %vm1694_vm7, %v1664_v61, %v1277_v33  ;;  %v1632_v11 = vsel %vm1628_vm5, %v1599_v15, %v1023_v34  ;;  %v4043_v61 = vld [vmem:[#allocation10_spill] sm:$0xff] }
 0x144   : > { %1046 = vrot.lane.b32.xlu1 %v4039_v3, %s2695_s26  ;;  %1426 = vrot.lane.b32.xlu0 %v4039_v3, %s2698_s8 }
 0x146   : > { %v1405_v5 = vpop.permute.xlu1 %1404  ;;  %v1279_v46 = vpop.permute.xlu0 %1278 }
 0x147   : > { %v1730_v1 = vsel %vm1727_vm8, %v1697_v17, %v1405_v5  ;;  %v4044_v17 = vld [vmem:[#allocation15_spill] sm:$0xff]  ;;  %v4045_v5 = vld [vmem:[#allocation6_spill] sm:$0xff] }
 0x148   : > { %792 = vrot.lane.b32.xlu1 %v3251_v32, %s2693_s20  ;;  %1172 = vrot.lane.b32.xlu0 %v3251_v32, %s2696_s4  ;;  %v1665_v32 = vsel %vm1661_vm6, %v1632_v11, %v1151_v44  ;;  %v1501_v44 = vsel %vm1496_vm0, %v4044_v17, %v4043_v61  ;;  %v4047_v11 = vld [vmem:[#allocation9_spill] sm:$0xff] }
 0x149   : > { %2607 = vmatprep.mubr.msk.f32.mxu0 %vm1765_vm9, %v1730_v1  ;;  %v1698_v33 = vsel %vm1694_vm7, %v1665_v32, %v1279_v46  ;;  %v4046_v46 = vld [vmem:[#allocation19_spill] sm:$0xff]  ;;  %v4048_v32 = vld [vmem:[#allocation14_spill] sm:$0xff] }
 0x14a   : > { %v1025_v36 = vpop.permute.xlu1 %1024  ;;  %v899_v2 = vpop.permute.xlu0 %898  ;;  %v1534_v1 = vsel %vm1529_vm2, %v1501_v44, %v4046_v46 }
 0x14c   : > { %1300 = vrot.lane.b32.xlu1 %v2471_v50, %s2697_s7  ;;  %1174 = vrot.lane.b32.xlu0 %v3248_v31, %s2696_s4 }
 0x14e   : > { %v1027_v51 = vpop.permute.xlu1 %1026  ;;  %v1407_v14 = vpop.permute.xlu0 %1406 }
 0x14f   : > { %v1731_v3 = vsel %vm1727_vm8, %v1698_v33, %v1407_v14  ;;  %v4050_v33 = vld [vmem:[#allocation18_spill] sm:$0xff] }
 0x150   : > { %920 = vrot.lane.b32.xlu1 %v2471_v50, %s2694_s25  ;;  %794 = vrot.lane.b32.xlu0 %v3248_v31, %s2693_s20  ;;  %v1567_v31 = vsel %vm1562_vm3, %v1534_v1, %v3409_v35 }
 0x151   : > { %2608 = vmatmul.mubr.msk.f32.gmra.mrb[2].mxu0 %vm1765_vm9, %v1731_v3  ;;  %v1600_v60 = vsel %vm1595_vm4, %v1567_v31, %v897_v19  ;;  %v1502_v19 = vsel %vm1496_vm0, %v4048_v32, %v4047_v11 }
 0x152   : > { %v1155_v47 = vpop.permute.xlu1 %1154  ;;  %v1153_v34 = vpop.permute.xlu0 %1152  ;;  %v1633_v62 = vsel %vm1628_vm5, %v1600_v60, %v1025_v36  ;;  %v4049_v36 = vld [vmem:[#allocation5_spill] sm:$0xff]  ;;  %v1535_v14 = vsel %vm1529_vm2, %v1502_v19, %v4050_v33  ;;  %v4053_v60 = vld [vmem:[#allocation20_spill] sm:$0xff] }
 0x153   : > { %v1666_v0 = vsel %vm1661_vm6, %v1633_v62, %v1153_v34  ;;  %v1568_v3 = vsel %vm1562_vm3, %v1535_v14, %v3407_v42 }
 0x154   : > { %1428 = vrot.lane.b32.xlu1 %v4045_v5, %s2698_s8  ;;  %1302 = vrot.lane.b32.xlu0 %v2472_v29, %s2697_s7  ;;  %v1601_v61 = vsel %vm1595_vm4, %v1568_v3, %v899_v2 }
 0x155   : > { %v1634_v17 = vsel %vm1628_vm5, %v1601_v61, %v1027_v51  ;;  %v4051_v51 = vld [vmem:[#allocation11_spill] sm:$0xff] }
 0x156   : > { %v901_v43 = vpop.permute.xlu1 %900  ;;  %v1281_v10 = vpop.permute.xlu0 %1280  ;;  %v1667_v44 = vsel %vm1661_vm6, %v1634_v17, %v1155_v47 }
 0x157   : > { %v1699_v50 = vsel %vm1694_vm7, %v1666_v0, %v1281_v10  ;;  %v4052_v10 = vld [vmem:[#allocation16_spill] sm:$0xff] }
 0x158   : > { %1048 = vrot.lane.b32.xlu1 %v4045_v5, %s2695_s26  ;;  %922 = vrot.lane.b32.xlu0 %v2472_v29, %s2694_s25  ;;  %v2473_v5 = vld [vmem:[%s2733_s17 + $0xf1] sm:$0xff]  ;;  %v1503_v47 = vsel %vm1496_vm0, %v4052_v10, %v4051_v51 }
 0x159   : > { %v1536_v62 = vsel %vm1529_vm2, %v1503_v47, %v4053_v60  ;;  %v2505_v0 = vld [vmem:[%s2733_s17 + $0xf2] sm:$0xff]  ;;  %v2507_v47 = vld [vmem:[%s2733_s17 + $0x10a] sm:$0xff] }
 0x15a   : > { %v1409_v49 = vpop.permute.xlu1 %1408  ;;  %v1283_v15 = vpop.permute.xlu0 %1282  ;;  %v2476_v60 = vld [vmem:[%s2733_s17 + $0x111] sm:$0xff] }
 0x15b   : > { %v1732_v35 = vsel %vm1727_vm8, %v1699_v50, %v1409_v49  ;;  %v1700_v46 = vsel %vm1694_vm7, %v1667_v44, %v1283_v15  ;;  %v2474_v50 = vld [vmem:[%s2733_s17 + $0xf9] sm:$0xff]  ;;  %v1569_v49 = vsel %vm1562_vm3, %v1536_v62, %v3417_v18 }
 0x15c   : > { %1050 = vrot.lane.b32.xlu1 %v4049_v36, %s2695_s26  ;;  %1430 = vrot.lane.b32.xlu0 %v4049_v36, %s2698_s8  ;;  %v1602_v11 = vsel %vm1595_vm4, %v1569_v49, %v901_v43  ;;  %v2412_v18 = vld [vmem:[%s2733_s17 + $0xfa] sm:$0xff]  ;;  %v1570_v43 = vsel %vm1562_vm3, %v3165_v21, %v3415_v16  ;;  %v2475_v21 = vld [vmem:[%s2733_s17 + $0x109] sm:$0xff] }
 0x15d   : > { %2610 = vmatprep.mubr.msk.f32.mxu0 %vm1765_vm9, %v1732_v35 }
 0x15e   : > { %v1029_v29 = vpop.permute.xlu1 %1028  ;;  %v903_v34 = vpop.permute.xlu0 %902 }
 0x15f   : > { %v1635_v32 = vsel %vm1628_vm5, %v1602_v11, %v1029_v29  ;;  %v1603_v61 = vsel %vm1595_vm4, %v1570_v43, %v903_v34 }
 0x160   : > { %796 = vrot.lane.b32.xlu1 %v3273_v56, %s2693_s20  ;;  %1176 = vrot.lane.b32.xlu0 %v3273_v56, %s2696_s4 }
 0x162   : > { %v1031_v42 = vpop.permute.xlu1 %1030  ;;  %v1411_v1 = vpop.permute.xlu0 %1410 }
 0x163   : > { %v1733_v31 = vsel %vm1727_vm8, %v1700_v46, %v1411_v1  ;;  %v1636_v17 = vsel %vm1628_vm5, %v1603_v61, %v1031_v42  ;;  %v1571_v42 = vsel %vm1562_vm3, %v3181_v26, %v3425_v48 }
 0x164   : > { %1304 = vrot.lane.b32.xlu1 %v2473_v5, %s2697_s7  ;;  %1178 = vrot.lane.b32.xlu0 %v3270_v28, %s2696_s4 }
 0x165   : > { %2611 = vmatmul.mubr.msk.f32.gmra.mrb[4].mxu0 %vm1765_vm9, %v1733_v31 }
 0x166   : > { %v1159_v2 = vpop.permute.xlu1 %1158  ;;  %v1157_v56 = vpop.permute.xlu0 %1156 }
 0x167   : > { %v1669_v44 = vsel %vm1661_vm6, %v1636_v17, %v1159_v2 }
 0x168   : > { %924 = vrot.lane.b32.xlu1 %v2473_v5, %s2694_s25  ;;  %798 = vrot.lane.b32.xlu0 %v3270_v28, %s2693_s20  ;;  %v1668_v28 = vsel %vm1661_vm6, %v1635_v32, %v1157_v56  ;;  %v2414_v32 = vld [vmem:[%s2733_s17 + $0x112] sm:$0xff] }
 0x16a   : > { %v905_v15 = vpop.permute.xlu1 %904  ;;  %v1285_v35 = vpop.permute.xlu0 %1284 }
 0x16b   : > { %v1701_v19 = vsel %vm1694_vm7, %v1668_v28, %v1285_v35  ;;  %v1604_v51 = vsel %vm1595_vm4, %v1571_v42, %v905_v15 }
 0x16c   : > { %1432 = vrot.lane.b32.xlu1 %v2505_v0, %s2698_s8  ;;  %1306 = vrot.lane.b32.xlu0 %v2474_v50, %s2697_s7 }
 0x16e   : > { %v1413_v36 = vpop.permute.xlu1 %1412  ;;  %v1287_v33 = vpop.permute.xlu0 %1286 }
 0x16f   : > { %v1734_v14 = vsel %vm1727_vm8, %v1701_v19, %v1413_v36  ;;  %v1702_v5 = vsel %vm1694_vm7, %v1669_v44, %v1287_v33 }
 0x170   : > { %1052 = vrot.lane.b32.xlu1 %v2505_v0, %s2695_s26  ;;  %926 = vrot.lane.b32.xlu0 %v2474_v50, %s2694_s25 }
 0x171   : > { %2613 = vmatprep.mubr.msk.f32.mxu0 %vm1765_vm9, %v1734_v14  ;;  %v2477_v14 = vld [vmem:[%s2733_s17 + $0x121] sm:$0xff] }
 0x172   : > { %v1033_v3 = vpop.permute.xlu1 %1032  ;;  %v907_v29 = vpop.permute.xlu0 %906 }
 0x174   : > { %1054 = vrot.lane.b32.xlu1 %v2412_v18, %s2695_s26  ;;  %1434 = vrot.lane.b32.xlu0 %v2412_v18, %s2698_s8  ;;  %v1573_v18 = vsel %vm1562_vm3, %v3197_v30, %v3433_v23  ;;  %v2509_v23 = vld [vmem:[%s2733_s17 + $0x122] sm:$0xff] }
 0x176   : > { %v1035_v46 = vpop.permute.xlu1 %1034  ;;  %v1415_v1 = vpop.permute.xlu0 %1414 }
 0x177   : > { %v1735_v31 = vsel %vm1727_vm8, %v1702_v5, %v1415_v1  ;;  %v1574_v1 = vsel %vm1562_vm3, %v3194_v4, %v3431_v20  ;;  %v2416_v20 = vld [vmem:[%s2733_s17 + $0x12a] sm:$0xff] }
 0x178   : > { %800 = vrot.lane.b32.xlu1 %v3295_v52, %s2693_s20  ;;  %1180 = vrot.lane.b32.xlu0 %v3295_v52, %s2696_s4  ;;  %v1637_v52 = vsel %vm1628_vm5, %v1604_v51, %v1033_v3 }
 0x179   : > { %2614 = vmatmul.mubr.msk.f32.gmra.mrb[6].mxu0 %vm1765_vm9, %v1735_v31 }
 0x17a   : > { %v1163_v16 = vpop.permute.xlu1 %1162  ;;  %v1161_v34 = vpop.permute.xlu0 %1160 }
 0x17b   : > { %v1670_v10 = vsel %vm1661_vm6, %v1637_v52, %v1161_v34 }
 0x17c   : > { %1308 = vrot.lane.b32.xlu1 %v2475_v21, %s2697_s7  ;;  %1182 = vrot.lane.b32.xlu0 %v3292_v63, %s2696_s4 }
 0x17e   : > { %v909_v2 = vpop.permute.xlu1 %908  ;;  %v1289_v56 = vpop.permute.xlu0 %1288 }
 0x17f   : > { %v1703_v62 = vsel %vm1694_vm7, %v1670_v10, %v1289_v56  ;;  %v2353_v10 = vld [vmem:[%s2733_s17 + $0x138] sm:$0xff] }
 0x180   : > { %928 = vrot.lane.b32.xlu1 %v2475_v21, %s2694_s25  ;;  %802 = vrot.lane.b32.xlu0 %v3292_v63, %s2693_s20  ;;  %v1572_v63 = vsel %vm1562_vm3, %v3178_v37, %v3423_v13 }
 0x181   : > { %v1605_v15 = vsel %vm1595_vm4, %v1572_v63, %v907_v29  ;;  %v1606_v29 = vsel %vm1595_vm4, %v1573_v18, %v909_v2 }
 0x182   : > { %v1417_v0 = vpop.permute.xlu1 %1416  ;;  %v1291_v26 = vpop.permute.xlu0 %1290  ;;  %v1638_v35 = vsel %vm1628_vm5, %v1605_v15, %v1035_v46  ;;  %v2478_v46 = vld [vmem:[%s2733_s17 + $0x129] sm:$0xff] }
 0x183   : > { %v1736_v48 = vsel %vm1727_vm8, %v1703_v62, %v1417_v0  ;;  %v1671_v11 = vsel %vm1661_vm6, %v1638_v35, %v1163_v16  ;;  %v2479_v62 = vld [vmem:[%s2733_s17 + $0x139] sm:$0xff] }
 0x184   : > { %1436 = vrot.lane.b32.xlu1 %v2507_v47, %s2698_s8  ;;  %1310 = vrot.lane.b32.xlu0 %v2476_v60, %s2697_s7  ;;  %v1704_v28 = vsel %vm1694_vm7, %v1671_v11, %v1291_v26  ;;  %v2448_v0 = vld [vmem:[%s2733_s17 + $0x140] sm:$0xff]  ;;  %v1575_v26 = vsel %vm1562_vm3, %v3213_v27, %v3441_v45 }
 0x185   : > { %2616 = vmatprep.mubr.msk.f32.mxu0 %vm1765_vm9, %v1736_v48  ;;  %v2511_v27 = vld [vmem:[%s2733_s17 + $0x13a] sm:$0xff] }
 0x186   : > { %v1037_v50 = vpop.permute.xlu1 %1036  ;;  %v911_v49 = vpop.permute.xlu0 %910  ;;  %v2480_v45 = vld [vmem:[%s2733_s17 + $0x141] sm:$0xff] }
 0x187   : > { %v1639_v61 = vsel %vm1628_vm5, %v1606_v29, %v1037_v50  ;;  %v1607_v16 = vsel %vm1595_vm4, %v1574_v1, %v911_v49 }
 0x188   : > { %1056 = vrot.lane.b32.xlu1 %v2507_v47, %s2695_s26  ;;  %930 = vrot.lane.b32.xlu0 %v2476_v60, %s2694_s25 }
 0x18a   : > { %v1039_v19 = vpop.permute.xlu1 %1038  ;;  %v1419_v36 = vpop.permute.xlu0 %1418 }
 0x18b   : > { %v1737_v37 = vsel %vm1727_vm8, %v1704_v28, %v1419_v36  ;;  %v1640_v34 = vsel %vm1628_vm5, %v1607_v16, %v1039_v19  ;;  %v1576_v19 = vsel %vm1562_vm3, %v3210_v7, %v3439_v12  ;;  %v2418_v12 = vld [vmem:[%s2733_s17 + $0x142] sm:$0xff] }
 0x18c   : > { %1058 = vrot.lane.b32.xlu1 %v2414_v32, %s2695_s26  ;;  %1438 = vrot.lane.b32.xlu0 %v2414_v32, %s2698_s8 }
 0x18d   : > { %2617 = vmatmul.mubr.msk.f32.gmra.mrb[8].mxu0 %vm1765_vm9, %v1737_v37 }
 0x18e   : > { %v1167_v13 = vpop.permute.xlu1 %1166  ;;  %v1165_v33 = vpop.permute.xlu0 %1164 }
 0x190   : > { %804 = vrot.lane.b32.xlu1 %v3317_v39, %s2693_s20  ;;  %1184 = vrot.lane.b32.xlu0 %v3317_v39, %s2696_s4  ;;  %v1672_v39 = vsel %vm1661_vm6, %v1639_v61, %v1165_v33 }
 0x192   : > { %v913_v43 = vpop.permute.xlu1 %912  ;;  %v1293_v3 = vpop.permute.xlu0 %1292 }
 0x193   : > { %v1705_v17 = vsel %vm1694_vm7, %v1672_v39, %v1293_v3  ;;  %v1608_v50 = vsel %vm1595_vm4, %v1575_v26, %v913_v43  ;;  %v2355_v39 = vld [vmem:[%s2733_s17 + $0x150] sm:$0xff]  ;;  %v2420_v26 = vld [vmem:[%s2733_s17 + $0x15a] sm:$0xff] }
 0x194   : > { %1312 = vrot.lane.b32.xlu1 %v2477_v14, %s2697_s7  ;;  %1186 = vrot.lane.b32.xlu0 %v3314_v22, %s2696_s4 }
 0x196   : > { %v1421_v44 = vpop.permute.xlu1 %1420  ;;  %v1295_v5 = vpop.permute.xlu0 %1294 }
 0x197   : > { %v1738_v30 = vsel %vm1727_vm8, %v1705_v17, %v1421_v44 }
 0x198   : > { %932 = vrot.lane.b32.xlu1 %v2477_v14, %s2694_s25  ;;  %806 = vrot.lane.b32.xlu0 %v3314_v22, %s2693_s20  ;;  %v1673_v22 = vsel %vm1661_vm6, %v1640_v34, %v1167_v13 }
 0x199   : > { %2619 = vmatprep.mubr.msk.f32.mxu0 %vm1765_vm9, %v1738_v30  ;;  %v1706_v42 = vsel %vm1694_vm7, %v1673_v22, %v1295_v5  ;;  %v2481_v5 = vld [vmem:[%s2733_s17 + $0x151] sm:$0xff] }
 0x19a   : > { %v1041_v31 = vpop.permute.xlu1 %1040  ;;  %v915_v21 = vpop.permute.xlu0 %914  ;;  %v2450_v30 = vld [vmem:[%s2733_s17 + $0x158] sm:$0xff] }
 0x19b   : > { %v1641_v49 = vsel %vm1628_vm5, %v1608_v50, %v1041_v31  ;;  %v1609_v13 = vsel %vm1595_vm4, %v1576_v19, %v915_v21  ;;  %v2357_v50 = vld [vmem:[%s2733_s17 + $0x168] sm:$0xff] }
 0x19c   : > { %1440 = vrot.lane.b32.xlu1 %v2509_v23, %s2698_s8  ;;  %1314 = vrot.lane.b32.xlu0 %v2478_v46, %s2697_s7 }
 0x19e   : > { %v1043_v2 = vpop.permute.xlu1 %1042  ;;  %v1423_v56 = vpop.permute.xlu0 %1422 }
 0x19f   : > { %v1739_v4 = vsel %vm1727_vm8, %v1706_v42, %v1423_v56  ;;  %v1642_v33 = vsel %vm1628_vm5, %v1609_v13, %v1043_v2  ;;  %v2482_v56 = vld [vmem:[%s2733_s17 + $0x159] sm:$0xff] }
 0x1a0   : > { %1060 = vrot.lane.b32.xlu1 %v2509_v23, %s2695_s26  ;;  %934 = vrot.lane.b32.xlu0 %v2478_v46, %s2694_s25 }
 0x1a1   : > { %2620 = vmatmul.mubr.msk.f32.gmra.mrb[10].mxu0 %vm1765_vm9, %v1739_v4 }
 0x1a2   : > { %v789_v51 = vpop.permute.xlu1 %788  ;;  %v1169_v52 = vpop.permute.xlu0 %1168 }
 0x1a3   : > { %v1674_v15 = vsel %vm1661_vm6, %v1641_v49, %v1169_v52  ;;  %v1577_v23 = vsel %vm1562_vm3, %v3235_v55, %v789_v51  ;;  %v2513_v55 = vld [vmem:[%s2733_s17 + $0x152] sm:$0xff] }
 0x1a4   : > { %1062 = vrot.lane.b32.xlu1 %v2416_v20, %s2695_s26  ;;  %1442 = vrot.lane.b32.xlu0 %v2416_v20, %s2698_s8 }
 0x1a6   : > { %v1297_v47 = vpop.permute.xlu1 %1296  ;;  %v1171_v60 = vpop.permute.xlu0 %1170 }
 0x1a7   : > { %v1707_v35 = vsel %vm1694_vm7, %v1674_v15, %v1297_v47  ;;  %v1675_v14 = vsel %vm1661_vm6, %v1642_v33, %v1171_v60 }
 0x1a8   : > { %808 = vrot.lane.b32.xlu1 %v2353_v10, %s2693_s20  ;;  %1188 = vrot.lane.b32.xlu0 %v2353_v10, %s2696_s4 }
 0x1aa   : > { %v917_v48 = vpop.permute.xlu1 %916  ;;  %v791_v63 = vpop.permute.xlu0 %790 }
 0x1ab   : > { %v1610_v31 = vsel %vm1595_vm4, %v1577_v23, %v917_v48  ;;  %v1578_v4 = vsel %vm1562_vm3, %v3232_v54, %v791_v63 }
 0x1ac   : > { %1316 = vrot.lane.b32.xlu1 %v2479_v62, %s2697_s7  ;;  %1190 = vrot.lane.b32.xlu0 %v2448_v0, %s2696_s4 }
 0x1ae   : > { %v1425_v11 = vpop.permute.xlu1 %1424  ;;  %v1299_v32 = vpop.permute.xlu0 %1298 }
 0x1af   : > { %v1740_v28 = vsel %vm1727_vm8, %v1707_v35, %v1425_v11  ;;  %v1708_v18 = vsel %vm1694_vm7, %v1675_v14, %v1299_v32  ;;  %v2483_v35 = vld [vmem:[%s2733_s17 + $0x169] sm:$0xff] }
 0x1b0   : > { %936 = vrot.lane.b32.xlu1 %v2479_v62, %s2694_s25  ;;  %810 = vrot.lane.b32.xlu0 %v2448_v0, %s2693_s20  ;;  %v2452_v11 = vld [vmem:[%s2733_s17 + $0x170] sm:$0xff] }
 0x1b1   : > { %2622 = vmatprep.mubr.msk.f32.mxu0 %vm1765_vm9, %v1740_v28 }
 0x1b2   : > { %v1045_v36 = vpop.permute.xlu1 %1044  ;;  %v919_v37 = vpop.permute.xlu0 %918 }
 0x1b3   : > { %v1643_v21 = vsel %vm1628_vm5, %v1610_v31, %v1045_v36  ;;  %v1611_v52 = vsel %vm1595_vm4, %v1578_v4, %v919_v37 }
 0x1b4   : > { %1444 = vrot.lane.b32.xlu1 %v2511_v27, %s2698_s8  ;;  %1318 = vrot.lane.b32.xlu0 %v2480_v45, %s2697_s7 }
 0x1b6   : > { %v1047_v43 = vpop.permute.xlu1 %1046  ;;  %v1427_v3 = vpop.permute.xlu0 %1426 }
 0x1b7   : > { %v1741_v7 = vsel %vm1727_vm8, %v1708_v18, %v1427_v3  ;;  %v1644_v10 = vsel %vm1628_vm5, %v1611_v52, %v1047_v43  ;;  %v2484_v18 = vld [vmem:[%s2733_s17 + $0x171] sm:$0xff]  ;;  %v2517_v52 = vld [vmem:[%s2733_s17 + $0x182] sm:$0xff] }
 0x1b8   : > { %1064 = vrot.lane.b32.xlu1 %v2511_v27, %s2695_s26  ;;  %938 = vrot.lane.b32.xlu0 %v2480_v45, %s2694_s25 }
 0x1b9   : > { %2623 = vmatmul.mubr.msk.f32.gmra.mrb[12].mxu0 %vm1765_vm9, %v1741_v7 }
 0x1ba   : > { %v793_v29 = vpop.permute.xlu1 %792  ;;  %v1173_v61 = vpop.permute.xlu0 %1172 }
 0x1bb   : > { %v1676_v16 = vsel %vm1661_vm6, %v1643_v21, %v1173_v61  ;;  %v1579_v32 = vsel %vm1562_vm3, %v3257_v9, %v793_v29  ;;  %v2515_v9 = vld [vmem:[%s2733_s17 + $0x16a] sm:$0xff]  ;;  %v2485_v21 = vld [vmem:[%s2733_s17 + $0x181] sm:$0xff] }
 0x1bc   : > { %1066 = vrot.lane.b32.xlu1 %v2418_v12, %s2695_s26  ;;  %1446 = vrot.lane.b32.xlu0 %v2418_v12, %s2698_s8 }
 0x1be   : > { %v1301_v17 = vpop.permute.xlu1 %1300  ;;  %v1175_v44 = vpop.permute.xlu0 %1174 }
 0x1bf   : > { %v1709_v34 = vsel %vm1694_vm7, %v1676_v16, %v1301_v17  ;;  %v1677_v47 = vsel %vm1661_vm6, %v1644_v10, %v1175_v44  ;;  %v2454_v16 = vld [vmem:[%s2733_s17 + $0x188] sm:$0xff] }
 0x1c0   : > { %812 = vrot.lane.b32.xlu1 %v2355_v39, %s2693_s20  ;;  %1192 = vrot.lane.b32.xlu0 %v2355_v39, %s2696_s4  ;;  %v2486_v10 = vld [vmem:[%s2733_s17 + $0x189] sm:$0xff] }
 0x1c2   : > { %v921_v46 = vpop.permute.xlu1 %920  ;;  %v795_v1 = vpop.permute.xlu0 %794 }
 0x1c3   : > { %v1612_v45 = vsel %vm1595_vm4, %v1579_v32, %v921_v46  ;;  %v1580_v43 = vsel %vm1562_vm3, %v3254_v38, %v795_v1  ;;  %v2359_v46 = vld [vmem:[%s2733_s17 + $0x180] sm:$0xff]  ;;  %v2455_v32 = vld [vmem:[%s2733_s17 + $0x198] sm:$0xff] }
 0x1c4   : > { %1320 = vrot.lane.b32.xlu1 %v2481_v5, %s2697_s7  ;;  %1194 = vrot.lane.b32.xlu0 %v2450_v30, %s2696_s4 }
 0x1c6   : > { %v1429_v22 = vpop.permute.xlu1 %1428  ;;  %v1303_v42 = vpop.permute.xlu0 %1302 }
 0x1c7   : > { %v1742_v2 = vsel %vm1727_vm8, %v1709_v34, %v1429_v22  ;;  %v1710_v60 = vsel %vm1694_vm7, %v1677_v47, %v1303_v42 }
 0x1c8   : > { %940 = vrot.lane.b32.xlu1 %v2481_v5, %s2694_s25  ;;  %814 = vrot.lane.b32.xlu0 %v2450_v30, %s2693_s20  ;;  %v2422_v5 = vld [vmem:[%s2733_s17 + $0x172] sm:$0xff] }
 0x1c9   : > { %2625 = vmatprep.mubr.msk.f32.mxu0 %vm1765_vm9, %v1742_v2 }
 0x1ca   : > { %v1049_v20 = vpop.permute.xlu1 %1048  ;;  %v923_v51 = vpop.permute.xlu0 %922 }
 0x1cb   : > { %v1645_v19 = vsel %vm1628_vm5, %v1612_v45, %v1049_v20  ;;  %v1613_v12 = vsel %vm1595_vm4, %v1580_v43, %v923_v51  ;;  %v2488_v45 = vld [vmem:[%s2733_s17 + $0x1a1] sm:$0xff] }
 0x1cc   : > { %1448 = vrot.lane.b32.xlu1 %v2513_v55, %s2698_s8  ;;  %1322 = vrot.lane.b32.xlu0 %v2482_v56, %s2697_s7  ;;  %v2519_v43 = vld [vmem:[%s2733_s17 + $0x19a] sm:$0xff] }
 0x1ce   : > { %v1051_v62 = vpop.permute.xlu1 %1050  ;;  %v1431_v0 = vpop.permute.xlu0 %1430 }
 0x1cf   : > { %v1743_v54 = vsel %vm1727_vm8, %v1710_v60, %v1431_v0  ;;  %v1646_v29 = vsel %vm1628_vm5, %v1613_v12, %v1051_v62 }
 0x1d0   : > { %1068 = vrot.lane.b32.xlu1 %v2513_v55, %s2695_s26  ;;  %942 = vrot.lane.b32.xlu0 %v2482_v56, %s2694_s25 }
 0x1d1   : > { %2626 = vmatmul.mubr.msk.f32.gmra.mrb[14].mxu0 %vm1765_vm9, %v1743_v54 }
 0x1d2   : > { %v797_v48 = vpop.permute.xlu1 %796  ;;  %v1177_v63 = vpop.permute.xlu0 %1176 }
 0x1d3   : > { %v1678_v36 = vsel %vm1661_vm6, %v1645_v19, %v1177_v63  ;;  %v1581_v34 = vsel %vm1562_vm3, %v3279_v6, %v797_v48  ;;  %v2487_v19 = vld [vmem:[%s2733_s17 + $0x199] sm:$0xff] }
 0x1d4   : > { %1070 = vrot.lane.b32.xlu1 %v2420_v26, %s2695_s26  ;;  %1450 = vrot.lane.b32.xlu0 %v2420_v26, %s2698_s8 }
 0x1d6   : > { %v1305_v49 = vpop.permute.xlu1 %1304  ;;  %v1179_v15 = vpop.permute.xlu0 %1178 }
 0x1d7   : > { %v1711_v37 = vsel %vm1694_vm7, %v1678_v36, %v1305_v49  ;;  %v1679_v61 = vsel %vm1661_vm6, %v1646_v29, %v1179_v15  ;;  %v2424_v49 = vld [vmem:[%s2733_s17 + $0x18a] sm:$0xff] }
 0x1d8   : > { %816 = vrot.lane.b32.xlu1 %v2357_v50, %s2693_s20  ;;  %1196 = vrot.lane.b32.xlu0 %v2357_v50, %s2696_s4 }
 0x1da   : > { %v925_v28 = vpop.permute.xlu1 %924  ;;  %v799_v27 = vpop.permute.xlu0 %798 }
 0x1db   : > { %v1614_v2 = vsel %vm1595_vm4, %v1581_v34, %v925_v28  ;;  %v1582_v47 = vsel %vm1562_vm3, %v3276_v57, %v799_v27 }
 0x1dc   : > { %1324 = vrot.lane.b32.xlu1 %v2483_v35, %s2697_s7  ;;  %1198 = vrot.lane.b32.xlu0 %v2452_v11, %s2696_s4 }
 0x1de   : > { %v1433_v13 = vpop.permute.xlu1 %1432  ;;  %v1307_v33 = vpop.permute.xlu0 %1306 }
 0x1df   : > { %v1744_v14 = vsel %vm1727_vm8, %v1711_v37, %v1433_v13  ;;  %v1712_v39 = vsel %vm1694_vm7, %v1679_v61, %v1307_v33 }
 0x1e0   : > { %944 = vrot.lane.b32.xlu1 %v2483_v35, %s2694_s25  ;;  %818 = vrot.lane.b32.xlu0 %v2452_v11, %s2693_s20  ;;  %v2456_v11 = vld [vmem:[%s2733_s17 + $0x1a0] sm:$0xff] }
 0x1e1   : > { %2628 = vmatprep.mubr.msk.f32.mxu1 %vm1765_vm9, %v1744_v14 }
 0x1e2   : > { %v1053_v3 = vpop.permute.xlu1 %1052  ;;  %v927_v7 = vpop.permute.xlu0 %926 }
 0x1e3   : > { %v1647_v55 = vsel %vm1628_vm5, %v1614_v2, %v1053_v3  ;;  %v1615_v0 = vsel %vm1595_vm4, %v1582_v47, %v927_v7 }
 0x1e4   : > { %1452 = vrot.lane.b32.xlu1 %v2515_v9, %s2698_s8  ;;  %1326 = vrot.lane.b32.xlu0 %v2484_v18, %s2697_s7 }
 0x1e6   : > { %v1055_v17 = vpop.permute.xlu1 %1054  ;;  %v1435_v44 = vpop.permute.xlu0 %1434 }
 0x1e7   : > { %v1745_v38 = vsel %vm1727_vm8, %v1712_v39, %v1435_v44  ;;  %v1648_v54 = vsel %vm1628_vm5, %v1615_v0, %v1055_v17 }
 0x1e8   : > { %1072 = vrot.lane.b32.xlu1 %v2515_v9, %s2695_s26  ;;  %946 = vrot.lane.b32.xlu0 %v2484_v18, %s2694_s25  ;;  %v2520_v18 = vld [vmem:[%s2733_s17 + $0x1a2] sm:$0xff] }
 0x1e9   : > { %2629 = vmatmul.mubr.msk.f32.vlgmr.msra.gmra.mrb[0].mxu1 %vm1765_vm9, %v1745_v38 }
 0x1ea   : > { %v801_v30 = vpop.permute.xlu1 %800  ;;  %v1181_v23 = vpop.permute.xlu0 %1180 }
 0x1eb   : > { %v1680_v56 = vsel %vm1661_vm6, %v1647_v55, %v1181_v23  ;;  %v1583_v36 = vsel %vm1562_vm3, %v3301_v8, %v801_v30 }
 0x1ec   : > { %1074 = vrot.lane.b32.xlu1 %v2422_v5, %s2695_s26  ;;  %1454 = vrot.lane.b32.xlu0 %v2422_v5, %s2698_s8 }
 0x1ee   : > { %v1309_v1 = vpop.permute.xlu1 %1308  ;;  %v1183_v31 = vpop.permute.xlu0 %1182 }
 0x1ef   : > { %v1713_v4 = vsel %vm1694_vm7, %v1680_v56, %v1309_v1  ;;  %v1681_v26 = vsel %vm1661_vm6, %v1648_v54, %v1183_v31 }
 0x1f0   : > { %820 = vrot.lane.b32.xlu1 %v2359_v46, %s2693_s20  ;;  %1200 = vrot.lane.b32.xlu0 %v2359_v46, %s2696_s4 }
 0x1f2   : > { %v929_v22 = vpop.permute.xlu1 %928  ;;  %v3810_v42 = vpop.permute.xlu0 %802 }
 0x1f3   : > { %v1616_v33 = vsel %vm1595_vm4, %v1583_v36, %v929_v22  ;;  %v1584_v17 = vsel %vm1562_vm3, %v3298_v41, %v3810_v42 }
 0x1f4   : > { %1328 = vrot.lane.b32.xlu1 %v2485_v21, %s2697_s7  ;;  %1202 = vrot.lane.b32.xlu0 %v2454_v16, %s2696_s4 }
 0x1f6   : > { %v1437_v20 = vpop.permute.xlu1 %1436  ;;  %v1311_v51 = vpop.permute.xlu0 %1310 }
 0x1f7   : > { %v1746_v6 = vsel %vm1727_vm8, %v1713_v4, %v1437_v20  ;;  %v1714_v48 = vsel %vm1694_vm7, %v1681_v26, %v1311_v51 }
 0x1f8   : > { %948 = vrot.lane.b32.xlu1 %v2485_v21, %s2694_s25  ;;  %822 = vrot.lane.b32.xlu0 %v2454_v16, %s2693_s20 }
 0x1f9   : > { %2631 = vmatprep.mubr.msk.f32.mxu1 %vm1765_vm9, %v1746_v6 }
 0x1fa   : > { %v1057_v60 = vpop.permute.xlu1 %1056  ;;  %v931_v62 = vpop.permute.xlu0 %930 }
 0x1fb   : > { %v1649_v14 = vsel %vm1628_vm5, %v1616_v33, %v1057_v60  ;;  %v1617_v23 = vsel %vm1595_vm4, %v1584_v17, %v931_v62 }
 0x1fc   : > { %1456 = vrot.lane.b32.xlu1 %v2517_v52, %s2698_s8  ;;  %1330 = vrot.lane.b32.xlu0 %v2486_v10, %s2697_s7 }
 0x1fe   : > { %v1059_v63 = vpop.permute.xlu1 %1058  ;;  %v1439_v50 = vpop.permute.xlu0 %1438 }
 0x1ff   : > { %v1747_v57 = vsel %vm1727_vm8, %v1714_v48, %v1439_v50  ;;  %v1650_v46 = vsel %vm1628_vm5, %v1617_v23, %v1059_v63 }
 0x200   : > { %1076 = vrot.lane.b32.xlu1 %v2517_v52, %s2695_s26  ;;  %950 = vrot.lane.b32.xlu0 %v2486_v10, %s2694_s25 }
 0x201   : > { %2632 = vmatmul.mubr.msk.f32.gmra.mrb[2].mxu1 %vm1765_vm9, %v1747_v57  ;;  %v4054_v57 = vld [vmem:[#allocation21_spill] sm:$0xff] }
 0x202   : > { %v805_v15 = vpop.permute.xlu1 %804  ;;  %v1185_v35 = vpop.permute.xlu0 %1184 }
 0x203   : > { %v1682_v9 = vsel %vm1661_vm6, %v1649_v14, %v1185_v35  ;;  %v1585_v56 = vsel %vm1562_vm3, %v3323_v40, %v805_v15 }
 0x204   : > { %1078 = vrot.lane.b32.xlu1 %v2424_v49, %s2695_s26  ;;  %1458 = vrot.lane.b32.xlu0 %v2424_v49, %s2698_s8 }
 0x206   : > { %v1313_v28 = vpop.permute.xlu1 %1312  ;;  %v1187_v27 = vpop.permute.xlu0 %1186 }
 0x207   : > { %v1715_v3 = vsel %vm1694_vm7, %v1682_v9, %v1313_v28  ;;  %v1683_v31 = vsel %vm1661_vm6, %v1650_v46, %v1187_v27 }
 0x208   : > { %1206 = vrot.lane.b32.xlu1 %v2456_v11, %s2696_s4  ;;  %1204 = vrot.lane.b32.xlu0 %v2455_v32, %s2696_s4 }
 0x20a   : > { %v933_v37 = vpop.permute.xlu1 %932  ;;  %v807_v13 = vpop.permute.xlu0 %806 }
 0x20b   : > { %v1618_v51 = vsel %vm1595_vm4, %v1585_v56, %v933_v37  ;;  %v1586_v49 = vsel %vm1562_vm3, %v4054_v57, %v807_v13 }
 0x20c   : > { %1334 = vrot.lane.b32.xlu1 %v2488_v45, %s2697_s7  ;;  %1332 = vrot.lane.b32.xlu0 %v2487_v19, %s2697_s7 }
 0x20e   : > { %v1441_v7 = vpop.permute.xlu1 %1440  ;;  %v1315_v12 = vpop.permute.xlu0 %1314 }
 0x20f   : > { %v1748_v8 = vsel %vm1727_vm8, %v1715_v3, %v1441_v7  ;;  %v1716_v21 = vsel %vm1694_vm7, %v1683_v31, %v1315_v12  ;;  %v4055_v31 = vld [vmem:[#allocation22_spill] sm:$0xff] }
 0x210   : > { %v2606_v29 = vpop.f32.mrb[0].mxu0  ;;  %1462 = vrot.lane.b32.xlu1 %v2520_v18, %s2698_s8  ;;  %1460 = vrot.lane.b32.xlu0 %v2519_v43, %s2698_s8 }
 0x211   : > { %2092 = vst [vmem:[%s3859_s14 + $0x8] sm:$0xff] %v2606_v29  ;;  %v2161_v61 = vmul.f32 %v2606_v29, %v2606_v29  ;;  %v1932_v39 = vpop.f32.mrb[1].mxu0  ;;  %2634 = vmatprep.mubr.msk.f32.mxu1 %vm1765_vm9, %v1748_v8 }
 0x212   : > { %2091 = vst [vmem:[%s3859_s14] sm:$0xff] %v1932_v39  ;;  %v2123_v44 = vadd.f32 %v2606_v29, %v1932_v39  ;;  %v2160_v38 = vmul.f32 %v1932_v39, %v1932_v39  ;;  %v1061_v5 = vpop.permute.xlu1 %1060  ;;  %v935_v30 = vpop.permute.xlu0 %934 }
 0x213   : > { %v1651_v6 = vsel %vm1628_vm5, %v1618_v51, %v1061_v5  ;;  %v1619_v32 = vsel %vm1595_vm4, %v1586_v49, %v935_v30 }
 0x214   : > { %v2192_v1 = vadd.f32 %v2161_v61, %v2160_v38 }
 0x216   : > { %v1063_v16 = vpop.permute.xlu1 %1062  ;;  %v1443_v34 = vpop.permute.xlu0 %1442 }
 0x217   : > { %v1749_v22 = vsel %vm1727_vm8, %v1716_v21, %v1443_v34  ;;  %v1652_v28 = vsel %vm1628_vm5, %v1619_v32, %v1063_v16 }
 0x218   : > { %2635 = vmatmul.mubr.msk.f32.gmra.mrb[4].mxu1 %vm1765_vm9, %v1749_v22 }
 0x21a   : > { %v809_v41 = vpop.permute.xlu1 %808  ;;  %v1189_v42 = vpop.permute.xlu0 %1188 }
 0x21b   : > { %v1684_v10 = vsel %vm1661_vm6, %v1651_v6, %v1189_v42  ;;  %v1587_v3 = vsel %vm1562_vm3, %v3341_v58, %v809_v41 }
 0x21e   : > { %v1317_v2 = vpop.permute.xlu1 %1316  ;;  %v1191_v55 = vpop.permute.xlu0 %1190 }
 0x21f   : > { %v1717_v60 = vsel %vm1694_vm7, %v1684_v10, %v1317_v2  ;;  %v1685_v27 = vsel %vm1661_vm6, %v1652_v28, %v1191_v55 }
 0x222   : > { %v937_v4 = vpop.permute.xlu1 %936  ;;  %v811_v20 = vpop.permute.xlu0 %810 }
 0x223   : > { %v1620_v61 = vsel %vm1595_vm4, %v1587_v3, %v937_v4  ;;  %v1588_v21 = vsel %vm1562_vm3, %v4055_v31, %v811_v20 }
 0x224   : > { %v2609_v52 = vpop.f32.mrb[2].mxu0 }
 0x225   : > { %2094 = vst [vmem:[%s3859_s14 + $0x18] sm:$0xff] %v2609_v52  ;;  %v1942_v47 = vpop.f32.mrb[3].mxu0  ;;  %v2163_v48 = vmul.f32 %v2609_v52, %v2609_v52 }
 0x226   : > { %2093 = vst [vmem:[%s3859_s14 + $0x10] sm:$0xff] %v1942_v47  ;;  %v2124_v62 = vadd.f32 %v2123_v44, %v1942_v47  ;;  %v2162_v0 = vmul.f32 %v1942_v47, %v1942_v47  ;;  %v1445_v54 = vpop.permute.xlu1 %1444  ;;  %v1319_v26 = vpop.permute.xlu0 %1318 }
 0x227   : > { %v1750_v40 = vsel %vm1727_vm8, %v1717_v60, %v1445_v54  ;;  %v1718_v45 = vsel %vm1694_vm7, %v1685_v27, %v1319_v26 }
 0x228   : > { %v2193_v63 = vadd.f32 %v2192_v1, %v2162_v0  ;;  %2637 = vmatprep.mubr.msk.f32.mxu1 %vm1765_vm9, %v1750_v40  ;;  %v2125_v50 = vadd.f32 %v2609_v52, %v2124_v62 }
 0x22a   : > { %v1065_v15 = vpop.permute.xlu1 %1064  ;;  %v939_v35 = vpop.permute.xlu0 %938  ;;  %v2194_v11 = vadd.f32 %v2193_v63, %v2163_v48 }
 0x22b   : > { %v1653_v39 = vsel %vm1628_vm5, %v1620_v61, %v1065_v15  ;;  %v1621_v22 = vsel %vm1595_vm4, %v1588_v21, %v939_v35 }
 0x22e   : > { %v1067_v19 = vpop.permute.xlu1 %1066  ;;  %v1447_v36 = vpop.permute.xlu0 %1446 }
 0x22f   : > { %v1751_v37 = vsel %vm1727_vm8, %v1718_v45, %v1447_v36  ;;  %v1654_v41 = vsel %vm1628_vm5, %v1621_v22, %v1067_v19 }
 0x230   : > { %2638 = vmatmul.mubr.msk.f32.gmra.mrb[6].mxu1 %vm1765_vm9, %v1751_v37 }
 0x232   : > { %v813_v13 = vpop.permute.xlu1 %812  ;;  %v1193_v33 = vpop.permute.xlu0 %1192 }
 0x233   : > { %v1686_v5 = vsel %vm1661_vm6, %v1653_v39, %v1193_v33  ;;  %v1589_v40 = vsel %vm1562_vm3, %v3357_v53, %v813_v13 }
 0x236   : > { %v1321_v14 = vpop.permute.xlu1 %1320  ;;  %v1195_v9 = vpop.permute.xlu0 %1194 }
 0x237   : > { %v1719_v30 = vsel %vm1694_vm7, %v1686_v5, %v1321_v14  ;;  %v1687_v42 = vsel %vm1661_vm6, %v1654_v41, %v1195_v9 }
 0x238   : > { %v2612_v18 = vpop.f32.mrb[4].mxu0 }
 0x239   : > { %2096 = vst [vmem:[%s3859_s14 + $0x28] sm:$0xff] %v2612_v18  ;;  %v1952_v43 = vpop.f32.mrb[5].mxu0  ;;  %v2165_v17 = vmul.f32 %v2612_v18, %v2612_v18 }
 0x23a   : > { %2095 = vst [vmem:[%s3859_s14 + $0x20] sm:$0xff] %v1952_v43  ;;  %v2126_v7 = vadd.f32 %v2125_v50, %v1952_v43  ;;  %v2164_v12 = vmul.f32 %v1952_v43, %v1952_v43  ;;  %v941_v8 = vpop.permute.xlu1 %940  ;;  %v815_v29 = vpop.permute.xlu0 %814 }
 0x23b   : > { %v1622_v57 = vsel %vm1595_vm4, %v1589_v40, %v941_v8  ;;  %v1590_v53 = vsel %vm1562_vm3, %v3354_v24, %v815_v29 }
 0x23c   : > { %v2195_v44 = vadd.f32 %v2194_v11, %v2164_v12  ;;  %v2127_v38 = vadd.f32 %v2612_v18, %v2126_v7 }
 0x23e   : > { %v1449_v23 = vpop.permute.xlu1 %1448  ;;  %v1323_v46 = vpop.permute.xlu0 %1322  ;;  %v2196_v1 = vadd.f32 %v2195_v44, %v2165_v17 }
 0x23f   : > { %v1752_v58 = vsel %vm1727_vm8, %v1719_v30, %v1449_v23  ;;  %v1720_v2 = vsel %vm1694_vm7, %v1687_v42, %v1323_v46 }
 0x240   : > { %2640 = vmatprep.mubr.msk.f32.mxu1 %vm1765_vm9, %v1752_v58 }
 0x242   : > { %v1069_v16 = vpop.permute.xlu1 %1068  ;;  %v943_v34 = vpop.permute.xlu0 %942 }
 0x243   : > { %v1655_v49 = vsel %vm1628_vm5, %v1622_v57, %v1069_v16  ;;  %v1623_v19 = vsel %vm1595_vm4, %v1590_v53, %v943_v34 }
 0x246   : > { %v1071_v55 = vpop.permute.xlu1 %1070  ;;  %v1451_v56 = vpop.permute.xlu0 %1450 }
 0x247   : > { %v1753_v4 = vsel %vm1727_vm8, %v1720_v2, %v1451_v56  ;;  %v1656_v36 = vsel %vm1628_vm5, %v1623_v19, %v1071_v55 }
 0x248   : > { %2641 = vmatmul.mubr.msk.f32.gmra.mrb[8].mxu1 %vm1765_vm9, %v1753_v4 }
 0x24a   : > { %v817_v51 = vpop.permute.xlu1 %816  ;;  %v1197_v6 = vpop.permute.xlu0 %1196 }
 0x24b   : > { %v1688_v15 = vsel %vm1661_vm6, %v1655_v49, %v1197_v6 }
 0x24c   : > { %v2615_v20 = vpop.f32.mrb[6].mxu0 }
 0x24d   : > { %2098 = vst [vmem:[%s3859_s14 + $0x38] sm:$0xff] %v2615_v20  ;;  %v1962_v52 = vpop.f32.mrb[7].mxu0  ;;  %v2167_v0 = vmul.f32 %v2615_v20, %v2615_v20 }
 0x24e   : > { %2097 = vst [vmem:[%s3859_s14 + $0x30] sm:$0xff] %v1962_v52  ;;  %v2128_v10 = vadd.f32 %v2127_v38, %v1962_v52  ;;  %v2166_v47 = vmul.f32 %v1962_v52, %v1962_v52  ;;  %v1325_v60 = vpop.permute.xlu1 %1324  ;;  %v1199_v62 = vpop.permute.xlu0 %1198  ;;  %v1591_v38 = vsel %vm1562_vm3, %v3373_v59, %v817_v51 }
 0x24f   : > { %v1721_v35 = vsel %vm1694_vm7, %v1688_v15, %v1325_v60  ;;  %v1689_v37 = vsel %vm1661_vm6, %v1656_v36, %v1199_v62 }
 0x250   : > { %v2197_v54 = vadd.f32 %v2196_v1, %v2166_v47  ;;  %v2129_v26 = vadd.f32 %v2615_v20, %v2128_v10 }
 0x252   : > { %v945_v48 = vpop.permute.xlu1 %944  ;;  %v819_v63 = vpop.permute.xlu0 %818  ;;  %v2198_v50 = vadd.f32 %v2197_v54, %v2167_v0 }
 0x253   : > { %v1624_v23 = vsel %vm1595_vm4, %v1591_v38, %v945_v48  ;;  %v1592_v59 = vsel %vm1562_vm3, %v3370_v25, %v819_v63  ;;  %v4057_v48 = vld [vmem:[#allocation23_spill] sm:$0xff] }
 0x256   : > { %v1453_v11 = vpop.permute.xlu1 %1452  ;;  %v1327_v32 = vpop.permute.xlu0 %1326 }
 0x257   : > { %v1754_v28 = vsel %vm1727_vm8, %v1721_v35, %v1453_v11  ;;  %v1722_v13 = vsel %vm1694_vm7, %v1689_v37, %v1327_v32 }
 0x258   : > { %2643 = vmatprep.mubr.msk.f32.mxu1 %vm1765_vm9, %v1754_v28 }
 0x25a   : > { %v1073_v27 = vpop.permute.xlu1 %1072  ;;  %v947_v45 = vpop.permute.xlu0 %946 }
 0x25b   : > { %v1657_v46 = vsel %vm1628_vm5, %v1624_v23, %v1073_v27  ;;  %v1625_v41 = vsel %vm1595_vm4, %v1592_v59, %v947_v45 }
 0x25e   : > { %v1075_v33 = vpop.permute.xlu1 %1074  ;;  %v1455_v14 = vpop.permute.xlu0 %1454 }
 0x25f   : > { %v1755_v9 = vsel %vm1727_vm8, %v1722_v13, %v1455_v14  ;;  %v1658_v42 = vsel %vm1628_vm5, %v1625_v41, %v1075_v33 }
 0x260   : > { %v2618_v18 = vpop.f32.mrb[8].mxu0  ;;  %2644 = vmatmul.mubr.msk.f32.gmra.mrb[10].mxu1 %vm1765_vm9, %v1755_v9 }
 0x261   : > { %2100 = vst [vmem:[%s3859_s14 + $0x48] sm:$0xff] %v2618_v18  ;;  %v1972_v43 = vpop.f32.mrb[9].mxu0  ;;  %v2169_v8 = vmul.f32 %v2618_v18, %v2618_v18 }
 0x262   : > { %2099 = vst [vmem:[%s3859_s14 + $0x40] sm:$0xff] %v1972_v43  ;;  %v2130_v24 = vadd.f32 %v2129_v26, %v1972_v43  ;;  %v2168_v3 = vmul.f32 %v1972_v43, %v1972_v43  ;;  %v821_v7 = vpop.permute.xlu1 %820  ;;  %v1201_v12 = vpop.permute.xlu0 %1200  ;;  %v4056_v26 = vld [vmem:[#allocation24_spill] sm:$0xff] }
 0x263   : > { %v1690_v1 = vsel %vm1661_vm6, %v1657_v46, %v1201_v12  ;;  %v1593_v40 = vsel %vm1562_vm3, %v4056_v26, %v821_v7 }
 0x264   : > { %v2199_v29 = vadd.f32 %v2198_v50, %v2168_v3  ;;  %v2131_v61 = vadd.f32 %v2618_v18, %v2130_v24 }
 0x266   : > { %v1329_v39 = vpop.permute.xlu1 %1328  ;;  %v1203_v17 = vpop.permute.xlu0 %1202  ;;  %v2200_v44 = vadd.f32 %v2199_v29, %v2169_v8 }
 0x267   : > { %v1723_v58 = vsel %vm1694_vm7, %v1690_v1, %v1329_v39  ;;  %v1691_v55 = vsel %vm1661_vm6, %v1658_v42, %v1203_v17 }
 0x26a   : > { %v949_v5 = vpop.permute.xlu1 %948  ;;  %v823_v30 = vpop.permute.xlu0 %822 }
 0x26b   : > { %v1594_v63 = vsel %vm1562_vm3, %v4057_v48, %v823_v30  ;;  %v1626_v49 = vsel %vm1595_vm4, %v1593_v40, %v949_v5 }
 0x26e   : > { %v1457_v31 = vpop.permute.xlu1 %1456  ;;  %v1331_v21 = vpop.permute.xlu0 %1330 }
 0x26f   : > { %v1756_v16 = vsel %vm1727_vm8, %v1723_v58, %v1457_v31  ;;  %v1724_v4 = vsel %vm1694_vm7, %v1691_v55, %v1331_v21 }
 0x270   : > { %2646 = vmatprep.mubr.msk.f32.mxu1 %vm1765_vm9, %v1756_v16 }
 0x272   : > { %v1077_v34 = vpop.permute.xlu1 %1076  ;;  %v951_v22 = vpop.permute.xlu0 %950 }
 0x273   : > { %v1627_v15 = vsel %vm1595_vm4, %v1594_v63, %v951_v22  ;;  %v1659_v35 = vsel %vm1628_vm5, %v1626_v49, %v1077_v34 }
 0x274   : > { %v2621_v2 = vpop.f32.mrb[10].mxu0 }
 0x275   : > { %2102 = vst [vmem:[%s3859_s14 + $0x58] sm:$0xff] %v2621_v2  ;;  %v1982_v56 = vpop.f32.mrb[11].mxu0  ;;  %v2171_v10 = vmul.f32 %v2621_v2, %v2621_v2 }
 0x276   : > { %2101 = vst [vmem:[%s3859_s14 + $0x50] sm:$0xff] %v1982_v56  ;;  %v2132_v51 = vadd.f32 %v2131_v61, %v1982_v56  ;;  %v2170_v6 = vmul.f32 %v1982_v56, %v1982_v56  ;;  %v1079_v20 = vpop.permute.xlu1 %1078  ;;  %v1459_v52 = vpop.permute.xlu0 %1458 }
 0x277   : > { %v1757_v25 = vsel %vm1727_vm8, %v1724_v4, %v1459_v52  ;;  %v1660_v11 = vsel %vm1628_vm5, %v1627_v15, %v1079_v20 }
 0x278   : > { %v2201_v47 = vadd.f32 %v2200_v44, %v2170_v6  ;;  %2647 = vmatmul.mubr.msk.f32.gmra.mrb[12].mxu1 %vm1765_vm9, %v1757_v25  ;;  %v2133_v60 = vadd.f32 %v2621_v2, %v2132_v51 }
 0x27a   : > { %v1207_v62 = vpop.permute.xlu1 %1206  ;;  %v1205_v0 = vpop.permute.xlu0 %1204  ;;  %v2202_v54 = vadd.f32 %v2201_v47, %v2171_v10 }
 0x27b   : > { %v1693_v32 = vsel %vm1661_vm6, %v1660_v11, %v1207_v62  ;;  %v1692_v28 = vsel %vm1661_vm6, %v1659_v35, %v1205_v0 }
 0x27e   : > { %v1335_v50 = vpop.permute.xlu1 %1334  ;;  %v1333_v57 = vpop.permute.xlu0 %1332 }
 0x27f   : > { %v1726_v53 = vsel %vm1694_vm7, %v1693_v32, %v1335_v50  ;;  %v1725_v27 = vsel %vm1694_vm7, %v1692_v28, %v1333_v57 }
 0x282   : > { %v1463_v45 = vpop.permute.xlu1 %1462  ;;  %v1461_v19 = vpop.permute.xlu0 %1460 }
 0x283   : > { %v1759_v36 = vsel %vm1727_vm8, %v1726_v53, %v1463_v45  ;;  %v1758_v37 = vsel %vm1727_vm8, %v1725_v27, %v1461_v19 }
 0x284   : > { %2649 = vmatprep.mubr.msk.f32.mxu1 %vm1765_vm9, %v1758_v37 }
 0x285   : > { %2650 = vmatmul.mubr.msk.f32.gmra.mrb[14].mxu1 %vm1765_vm9, %v1759_v36 }
 0x28c   : > { %v2624_v13 = vpop.f32.mrb[12].mxu0 }
 0x28d   : > { %2104 = vst [vmem:[%s3859_s14 + $0x68] sm:$0xff] %v2624_v13  ;;  %v1992_v33 = vpop.f32.mrb[13].mxu0  ;;  %v2173_v18 = vmul.f32 %v2624_v13, %v2624_v13 }
 0x28e   : > { %2103 = vst [vmem:[%s3859_s14 + $0x60] sm:$0xff] %v1992_v33  ;;  %v2134_v14 = vadd.f32 %v2133_v60, %v1992_v33  ;;  %v2172_v9 = vmul.f32 %v1992_v33, %v1992_v33 }
 0x290   : > { %v2203_v43 = vadd.f32 %v2202_v54, %v2172_v9  ;;  %v2135_v24 = vadd.f32 %v2624_v13, %v2134_v14 }
 0x292   : > { %v2204_v3 = vadd.f32 %v2203_v43, %v2173_v18 }
 0x2a4   : > { %v2627_v7 = vpop.f32.mrb[14].mxu0 }
 0x2a5   : > { %2106 = vst [vmem:[%s3859_s14 + $0x78] sm:$0xff] %v2627_v7  ;;  %v2002_v12 = vpop.f32.mrb[15].mxu0  ;;  %v2175_v61 = vmul.f32 %v2627_v7, %v2627_v7 }
 0x2a6   : > { %2105 = vst [vmem:[%s3859_s14 + $0x70] sm:$0xff] %v2002_v12  ;;  %v2136_v8 = vadd.f32 %v2135_v24, %v2002_v12  ;;  %v2174_v29 = vmul.f32 %v2002_v12, %v2002_v12 }
 0x2a8   : > { %v2137_v39 = vadd.f32 %v2627_v7, %v2136_v8  ;;  %v2205_v17 = vadd.f32 %v2204_v3, %v2174_v29 }
 0x2aa   : > { %v2206_v44 = vadd.f32 %v2205_v17, %v2175_v61 }
 0x2bc   : > { %v2630_v38 = vpop.f32.mrb[0].mxu1 }
 0x2bd   : > { %2108 = vst [vmem:[%s3859_s14 + $0x88] sm:$0xff] %v2630_v38  ;;  %v2012_v5 = vpop.f32.mrb[1].mxu1  ;;  %v2177_v46 = vmul.f32 %v2630_v38, %v2630_v38 }
 0x2be   : > { %2107 = vst [vmem:[%s3859_s14 + $0x80] sm:$0xff] %v2012_v5  ;;  %v2138_v30 = vadd.f32 %v2137_v39, %v2012_v5  ;;  %v2176_v23 = vmul.f32 %v2012_v5, %v2012_v5 }
 0x2c0   : > { %v2207_v1 = vadd.f32 %v2206_v44, %v2176_v23  ;;  %v2139_v58 = vadd.f32 %v2630_v38, %v2138_v30 }
 0x2c2   : > { %v2208_v31 = vadd.f32 %v2207_v1, %v2177_v46 }
 0x2d4   : > { %v2633_v21 = vpop.f32.mrb[2].mxu1 }
 0x2d5   : > { %2110 = vst [vmem:[%s3859_s14 + $0x98] sm:$0xff] %v2633_v21  ;;  %v2022_v16 = vpop.f32.mrb[3].mxu1  ;;  %v2179_v22 = vmul.f32 %v2633_v21, %v2633_v21 }
 0x2d6   : > { %2109 = vst [vmem:[%s3859_s14 + $0x90] sm:$0xff] %v2022_v16  ;;  %v2140_v59 = vadd.f32 %v2139_v58, %v2022_v16  ;;  %v2178_v34 = vmul.f32 %v2022_v16, %v2022_v16 }
 0x2d8   : > { %v2209_v41 = vadd.f32 %v2208_v31, %v2178_v34  ;;  %v2141_v42 = vadd.f32 %v2633_v21, %v2140_v59 }
 0x2da   : > { %v2210_v2 = vadd.f32 %v2209_v41, %v2179_v22 }
 0x2eb   : > { %v2636_v55 = vpop.f32.mrb[4].mxu1 }
 0x2ec   : > { %2112 = vst [vmem:[%s3859_s14 + $0xa8] sm:$0xff] %v2636_v55  ;;  %v2032_v56 = vpop.f32.mrb[5].mxu1  ;;  %v2181_v6 = vmul.f32 %v2636_v55, %v2636_v55 }
 0x2ed   : > { %2111 = vst [vmem:[%s3859_s14 + $0xa0] sm:$0xff] %v2032_v56  ;;  %v2142_v4 = vadd.f32 %v2141_v42, %v2032_v56  ;;  %v2180_v51 = vmul.f32 %v2032_v56, %v2032_v56 }
 0x2ef   : > { %v2211_v20 = vadd.f32 %v2210_v2, %v2180_v51  ;;  %v2143_v52 = vadd.f32 %v2636_v55, %v2142_v4 }
 0x2f1   : > { %v2212_v25 = vadd.f32 %v2211_v20, %v2181_v6 }
 0x303   : > { %v2639_v10 = vpop.f32.mrb[6].mxu1 }
 0x304   : > { %2114 = vst [vmem:[%s3859_s14 + $0xb8] sm:$0xff] %v2639_v10  ;;  %v2042_v47 = vpop.f32.mrb[7].mxu1  ;;  %v2183_v0 = vmul.f32 %v2639_v10, %v2639_v10 }
 0x305   : > { %2113 = vst [vmem:[%s3859_s14 + $0xb0] sm:$0xff] %v2042_v47  ;;  %v2144_v60 = vadd.f32 %v2143_v52, %v2042_v47  ;;  %v2182_v62 = vmul.f32 %v2042_v47, %v2042_v47 }
 0x307   : > { %v2213_v54 = vadd.f32 %v2212_v25, %v2182_v62  ;;  %v2145_v26 = vadd.f32 %v2639_v10, %v2144_v60 }
 0x309   : > { %v2214_v40 = vadd.f32 %v2213_v54, %v2183_v0 }
 0x31b   : > { %v2642_v48 = vpop.f32.mrb[8].mxu1 }
 0x31c   : > { %2116 = vst [vmem:[%s3859_s14 + $0xc8] sm:$0xff] %v2642_v48  ;;  %v2052_v63 = vpop.f32.mrb[9].mxu1  ;;  %v2185_v49 = vmul.f32 %v2642_v48, %v2642_v48 }
 0x31d   : > { %2115 = vst [vmem:[%s3859_s14 + $0xc0] sm:$0xff] %v2052_v63  ;;  %v2146_v50 = vadd.f32 %v2145_v26, %v2052_v63  ;;  %v2184_v57 = vmul.f32 %v2052_v63, %v2052_v63 }
 0x31f   : > { %v2215_v15 = vadd.f32 %v2214_v40, %v2184_v57  ;;  %v2147_v35 = vadd.f32 %v2642_v48, %v2146_v50 }
 0x321   : > { %v2216_v11 = vadd.f32 %v2215_v15, %v2185_v49 }
 0x333   : > { %v2645_v32 = vpop.f32.mrb[10].mxu1 }
 0x334   : > { %2118 = vst [vmem:[%s3859_s14 + $0xd8] sm:$0xff] %v2645_v32  ;;  %v2062_v28 = vpop.f32.mrb[11].mxu1  ;;  %v2187_v45 = vmul.f32 %v2645_v32, %v2645_v32 }
 0x335   : > { %2117 = vst [vmem:[%s3859_s14 + $0xd0] sm:$0xff] %v2062_v28  ;;  %v2148_v53 = vadd.f32 %v2147_v35, %v2062_v28  ;;  %v2186_v27 = vmul.f32 %v2062_v28, %v2062_v28 }
 0x337   : > { %v2217_v19 = vadd.f32 %v2216_v11, %v2186_v27  ;;  %v2149_v36 = vadd.f32 %v2645_v32, %v2148_v53 }
 0x339   : > { %v2218_v37 = vadd.f32 %v2217_v19, %v2187_v45 }
 0x34b   : > { %v2648_v13 = vpop.f32.mrb[12].mxu1 }
 0x34c   : > { %2120 = vst [vmem:[%s3859_s14 + $0xe8] sm:$0xff] %v2648_v13  ;;  %v2072_v33 = vpop.f32.mrb[13].mxu1  ;;  %v2189_v18 = vmul.f32 %v2648_v13, %v2648_v13 }
 0x34d   : > { %2119 = vst [vmem:[%s3859_s14 + $0xe0] sm:$0xff] %v2072_v33  ;;  %v2150_v14 = vadd.f32 %v2149_v36, %v2072_v33  ;;  %v2188_v9 = vmul.f32 %v2072_v33, %v2072_v33 }
 0x34f   : > { %v2219_v43 = vadd.f32 %v2218_v37, %v2188_v9  ;;  %v2151_v24 = vadd.f32 %v2648_v13, %v2150_v14 }
 0x351   : > { %v2220_v3 = vadd.f32 %v2219_v43, %v2189_v18 }
 0x358   : > { %v2651_v7 = vpop.f32.mrb[14].mxu1 }
 0x359   : > { %2122 = vst [vmem:[%s3859_s14 + $0xf8] sm:$0xff] %v2651_v7  ;;  %v2082_v12 = vpop.f32.mrb[15].mxu1  ;;  %v2191_v61 = vmul.f32 %v2651_v7, %v2651_v7 }
 0x35a   : > { %2121 = vst [vmem:[%s3859_s14 + $0xf0] sm:$0xff] %v2082_v12  ;;  %v2152_v8 = vadd.f32 %v2151_v24, %v2082_v12  ;;  %v2190_v29 = vmul.f32 %v2082_v12, %v2082_v12 }
 0x35c   : > { %v2153_v39 = vadd.f32 %v2651_v7, %v2152_v8  ;;  %v2221_v17 = vadd.f32 %v2220_v3, %v2190_v29 }
 0x35e   : > { %v2154_v44 = vrot.slane %v2153_v39, 4  ;;  %v2222_v38 = vadd.f32 %v2221_v17, %v2191_v61 }
 0x360   : > { %v2155_v5 = vadd.f32 %v2154_v44, %v2153_v39  ;;  %v2223_v30 = vrot.slane %v2222_v38, 4 }
 0x362   : > { %v2156_v23 = vrot.slane %v2155_v5, 2  ;;  %v2224_v46 = vadd.f32 %v2223_v30, %v2222_v38 }
 0x364   : > { %v2157_v1 = vadd.f32 %v2156_v23, %v2155_v5  ;;  %v2225_v58 = vrot.slane %v2224_v46, 2 }
 0x366   : > { %v2158_v31 = vrot.slane %v2157_v1, 1  ;;  %v2226_v21 = vadd.f32 %v2225_v58, %v2224_v46 }
 0x368   : > { %v2227_v16 = vrot.slane %v2226_v21, 1  ;;  %v2159_v59 = vadd.f32 %v2158_v31, %v2157_v1 }
 0x36a   : > { %v2228_v34 = vadd.f32 %v2227_v16, %v2226_v21 }
 0x36c   : > { %v2230_v22 = vsel %vm2229_vm10, %v2159_v59, %v2228_v34 }
 0x36d   : > { %v2232_v41 = vsel %vm2231_vm11, %v2230_v22, 0.0 }
 0x36e   : > { %2233 = vst [vmem:[%s181_s18] sm:$0xff] %v2232_v41 }
 0x36f PF: > { %s14_s12 = sadd.s32 1, %s2689_s12  }
 0x370   : > { %p11_p4 = scmp.ge.s32.totalorder %s14_s12, 4  }
 0x372   :  { %13 = sbr.rel (!%p11_p4) target bundleno = 1 (0x1), region = 72 }

</bundles_post_ra>
